<compile_context>
chip_gen: v6e
topology: v6e:2x2x1
jax: 0.10.0
libtpu: 0.0.40
codegen_flags: <defaults>
</compile_context>

<pallas_src>
import functools

import jax
import jax.numpy as jnp
import numpy as np
from jax.experimental import pallas as pl
from jax.experimental.pallas import tpu as pltpu

# Keep ref (plain-JAX) and kernel matmuls in true f32 so the correctness check is tight.
jax.config.update("jax_default_matmul_precision", "highest")

KERNEL_SIZE = 7
PAD = KERNEL_SIZE // 2


def _round_up(v, m):
    return ((v + m - 1) // m) * m


def _ceil_div(a, b):
    return -(-a // b)


def _tpu_vmem_bytes():
    """Best-effort VMEM capacity query; conservative 64 MiB fallback (v7x)."""
    try:
        info = pltpu.get_tpu_info()
        for attr in ("vmem_capacity_bytes", "vmem_bytes", "vmem_size_bytes"):
            v = getattr(info, attr, None)
            if v:
                return int(v)
    except Exception:
        pass
    return 64 * 1024 * 1024


def _is_v5():
    try:
        return "v5" in jax.devices()[0].device_kind.lower()
    except Exception:
        return False


def cbam_kernel(x_ref, w1_ref, b1_ref, w2_ref, b2_ref, wc_ref, bc_ref, o_ref,
                avg_scr, max_scr, *, C, L, compute_dtype):
    """One grid step processes a (bt, C, L) batch block (ragged last block allowed)."""
    f32 = jnp.float32
    x = x_ref[...]                                     # (Bt, C, L) — native dtype
    if x.dtype != np.dtype(compute_dtype):
        x = x.astype(compute_dtype)
    Bt = x.shape[0]
    Lp = avg_scr.shape[1]                              # lane-aligned length for the conv

    # ---------------- Channel attention ----------------
    avg_c = jnp.sum(x, axis=2, dtype=f32) * (1.0 / L)  # (Bt, C), f32 accumulation
    max_c = jnp.max(x, axis=2).astype(f32)             # (Bt, C)

    w1 = w1_ref[...]
    b1 = b1_ref[...]
    w2 = w2_ref[...]
    b2 = b2_ref[...]

    def mlp(v):
        h = jnp.maximum(jnp.dot(v, w1, preferred_element_type=f32) + b1, 0.0)
        return jnp.dot(h, w2, preferred_element_type=f32) + b2

    ch_attn = jax.nn.sigmoid(mlp(avg_c) + mlp(max_c))                 # (Bt, C) f32
    x1 = x * ch_attn.astype(compute_dtype)[:, :, None]                # (Bt, C, L)

    # ---------------- Spatial attention -----------------
    avg_s = jnp.sum(x1, axis=1, dtype=f32) * (1.0 / C)                # (Bt, L) f32
    max_s = jnp.max(x1, axis=1).astype(f32)                           # (Bt, L) f32

    # Stage pooled rows into lane-aligned scratch so the 7-tap conv (padding=3) can use XLU
    # lane rotations; boundary masks at the real L edges give exact zero-padding semantics.
    avg_scr[:, :L] = avg_s
    max_scr[:, :L] = max_s
    a_full = avg_scr[...]                                             # (Bt, Lp)
    m_full = max_scr[...]

    l_pos = jax.lax.broadcasted_iota(jnp.int32, (Bt, Lp), 1)
    acc = jnp.zeros((Bt, Lp), f32) + bc_ref[0, 0]                     # bias broadcast hoisted
    for k in range(KERNEL_SIZE):
        off = k - PAD                                                 # tap reads input l + off
        sh = (-off) % Lp
        a_k = pltpu.roll(a_full, shift=sh, axis=1) if sh else a_full
        m_k = pltpu.roll(m_full, shift=sh, axis=1) if sh else m_full
        tap = wc_ref[0, k] * a_k + wc_ref[1, k] * m_k
        valid = jnp.logical_and(l_pos + off >= 0, l_pos + off < L)
        acc = acc + jnp.where(valid, tap, 0.0)

    sp_attn = jax.nn.sigmoid(acc[:, :L]).astype(compute_dtype)[:, None, :]   # (Bt, 1, L)
    o_ref[...] = (x1 * sp_attn).astype(o_ref.dtype)


def cbam_pallas(x, params):
    B, C, L = x.shape
    R = params["w1"].shape[0]
    f32 = jnp.float32

    R_pad = _round_up(R, 128)          # lane-dense hidden width (weights are tiny)
    Lp = _round_up(L, 128)             # lane-aligned scratch width for the spatial conv

    vmem_cap = _tpu_vmem_bytes()
    big_vmem = vmem_cap >= 100 * 1024 * 1024          # v5e / v6e (128 MiB); else v7x-like

    # Big-tensor compute dtype: keep bf16 native except on v5e (no bf16 VPU).
    if x.dtype == jnp.bfloat16 and not _is_v5():
        compute_dtype = jnp.bfloat16
    else:
        compute_dtype = f32

    # ---- batch-block heuristic (generation aware, ragged last block allowed) ----
    per_b = C * L * x.dtype.itemsize                  # HBM bytes per batch element
    target_blk = (6 * 1024 * 1024) if big_vmem else (5 * 512 * 1024)   # 6 MiB vs 2.5 MiB
    bt = max(1, min(B, target_blk // max(per_b, 1)))
    steps = _ceil_div(B, bt)
    # Prefer >= 2 grid steps (pipelining / 2 TCs) but never shrink blocks below ~1 MiB for it.
    if steps == 1 and B > 1 and (B // 2) * per_b >= (1 << 20):
        bt = _ceil_div(B, 2)
        steps = _ceil_div(B, bt)
    # 2-TensorCore chips: prefer an even step count so the parallel batch axis splits evenly.
    if (not big_vmem) and steps > 1 and steps % 2 == 1:
        cand = _ceil_div(B, steps + 1)
        if cand >= 1 and cand * per_b >= (1 << 19):
            bt = cand
            steps = _ceil_div(B, bt)

    vmem_limit = (96 * 1024 * 1024) if big_vmem else (56 * 1024 * 1024)

    # Zero-padded, pre-transposed MLP weights (padded hidden units contribute exactly 0).
    w1t = jnp.zeros((C, R_pad), f32).at[:, :R].set(params["w1"].T.astype(f32))
    b1 = jnp.zeros((1, R_pad), f32).at[0, :R].set(params["b1"][:, 0].astype(f32))
    w2t = jnp.zeros((R_pad, C), f32).at[:R, :].set(params["w2"].T.astype(f32))
    b2 = params["b2"][:, 0].astype(f32).reshape(1, C)
    wc = params["wc"].astype(f32)
    bc = params["bc"].astype(f32)

    cost = pl.CostEstimate(
        flops=int(6 * B * C * L + 30 * B * L + 8 * B * C * R_pad),
        transcendentals=int(B * (C + L)),
        bytes_accessed=int(2 * B * C * L * x.dtype.itemsize),
    )

    out = pl.pallas_call(
        functools.partial(cbam_kernel, C=C, L=L, compute_dtype=compute_dtype),
        out_shape=jax.ShapeDtypeStruct((B, C, L), x.dtype),
        grid=(steps,),
        in_specs=[
            pl.BlockSpec((bt, C, L), lambda b: (b, 0, 0)),            # x block (full C, L dims)
            pl.BlockSpec((C, R_pad), lambda b: (0, 0)),               # W1^T (padded hidden)
            pl.BlockSpec((1, R_pad), lambda b: (0, 0)),               # b1
            pl.BlockSpec((R_pad, C), lambda b: (0, 0)),               # W2^T
            pl.BlockSpec((1, C), lambda b: (0, 0)),                   # b2
            pl.BlockSpec(memory_space=pltpu.MemorySpace.SMEM),        # conv weight (2, K)
            pl.BlockSpec(memory_space=pltpu.MemorySpace.SMEM),        # conv bias (1, 1)
        ],
        out_specs=pl.BlockSpec((bt, C, L), lambda b: (b, 0, 0)),
        scratch_shapes=[
            pltpu.VMEM((bt, Lp), jnp.float32),                        # staged avg pooled rows
            pltpu.VMEM((bt, Lp), jnp.float32),                        # staged max pooled rows
        ],
        compiler_params=pltpu.CompilerParams(
            dimension_semantics=("parallel",),
            vmem_limit_bytes=vmem_limit,
        ),
        cost_estimate=cost,
    )(x, w1t, b1, w2t, b2, wc, bc)

    return out


def cbam_ref(x, p):
    """Pure-JAX reference mirroring the PyTorch forward."""
    avg = x.mean(axis=2)                              # (B, C)
    mx = x.max(axis=2)                                # (B, C)
    w1, w2 = p["w1"], p["w2"]
    b1, b2 = p["b1"][:, 0], p["b2"][:, 0]

    def mlp(v):
        return jnp.maximum(v @ w1.T + b1, 0.0) @ w2.T + b2

    ch_attn = jax.nn.sigmoid(mlp(avg) + mlp(mx))[:, :, None]
    x1 = x * ch_attn

    avg_s = x1.mean(axis=1, keepdims=True)
    max_s = x1.max(axis=1, keepdims=True)
    xc = jnp.concatenate([avg_s, max_s], axis=1)      # (B, 2, L)
    wc = p["wc"][None]                                # (1, 2, K)
    conv = jax.lax.conv_general_dilated(
        xc, wc, window_strides=(1,), padding=((PAD, PAD),),
        dimension_numbers=("NCH", "OIH", "NCH"))
    sp_attn = jax.nn.sigmoid(conv + p["bc"][0, 0])
    return x1 * sp_attn


def init_params(in_channels, reduction_ratio=16, kernel_size=KERNEL_SIZE, key=None):
    reduced = max(1, in_channels // reduction_ratio)
    keys = jax.random.split(key, 6)
    return {
        "w1": 0.1 * jax.random.normal(keys[0], (reduced, in_channels), jnp.float32),
        "b1": 0.1 * jax.random.normal(keys[1], (reduced, 1), jnp.float32),
        "w2": 0.1 * jax.random.normal(keys[2], (in_channels, reduced), jnp.float32),
        "b2": 0.1 * jax.random.normal(keys[3], (in_channels, 1), jnp.float32),
        "wc": 0.1 * jax.random.normal(keys[4], (2, kernel_size), jnp.float32),
        "bc": 0.1 * jax.random.normal(keys[5], (1, 1), jnp.float32),
    }


if __name__ == "__main__":
    B, C, L = 2, 4, 16
    kx, kp = jax.random.split(jax.random.PRNGKey(0))
    x = jax.random.normal(kx, (B, C, L), jnp.float32)
    params = init_params(C, reduction_ratio=16, key=kp)

    out = cbam_pallas(x, params)
    jax.block_until_ready(out)

    ref = cbam_ref(x, params)
    np.testing.assert_allclose(np.asarray(out), np.asarray(ref), rtol=1e-4, atol=1e-5)

    print("KERNEL_OK")
</pallas_src>

<mosaic_0001>
module attributes {stable_mosaic.version = 11 : i64} {
  func.func @cbam_kernel(%arg0: i32, %arg1: memref<2x4x16xf32, #tpu.memory_space<vmem>>, %arg2: memref<4x128xf32, #tpu.memory_space<vmem>>, %arg3: memref<1x128xf32, #tpu.memory_space<vmem>>, %arg4: memref<128x4xf32, #tpu.memory_space<vmem>>, %arg5: memref<1x4xf32, #tpu.memory_space<vmem>>, %arg6: memref<2x7xf32, #tpu.memory_space<smem>>, %arg7: memref<1x1xf32, #tpu.memory_space<smem>>, %arg8: memref<2x4x16xf32, #tpu.memory_space<vmem>>, %arg9: memref<2x128xf32, #tpu.memory_space<vmem>>, %arg10: memref<2x128xf32, #tpu.memory_space<vmem>>) attributes {dimension_semantics = [#tpu.dimension_semantics<parallel>], iteration_bounds = array<i64: 1>, scalar_prefetch = 0 : i64, scratch_operands = 2 : i64, tpu.core_type = #tpu.core_type<tc>, window_params = [{transform_indices = @transform_0, window_bounds = array<i64: 2, 4, 16>}, {pipeline_mode = #tpu.pipeline_mode<synchronous>, transform_indices = @transform_1, window_bounds = array<i64: 4, 128>}, {pipeline_mode = #tpu.pipeline_mode<synchronous>, transform_indices = @transform_2, window_bounds = array<i64: 1, 128>}, {pipeline_mode = #tpu.pipeline_mode<synchronous>, transform_indices = @transform_3, window_bounds = array<i64: 128, 4>}, {pipeline_mode = #tpu.pipeline_mode<synchronous>, transform_indices = @transform_4, window_bounds = array<i64: 1, 4>}, {transform_indices = @transform_5, window_bounds = array<i64: 2, 7>}, {transform_indices = @transform_6, window_bounds = array<i64: 1, 1>}, {transform_indices = @transform_7, window_bounds = array<i64: 2, 4, 16>}]} {
    %c0 = arith.constant 0 : index
    %c0_0 = arith.constant 0 : index
    %c0_1 = arith.constant 0 : index
    %0 = vector.load %arg1[%c0, %c0_0, %c0_1] : memref<2x4x16xf32, #tpu.memory_space<vmem>>, vector<2x4x16xf32>
    %cst = arith.constant dense<0.000000e+00> : vector<2x4xf32>
    %1 = vector.multi_reduction <add>, %0, %cst [2] : vector<2x4x16xf32> to vector<2x4xf32>
    %cst_2 = arith.constant 6.250000e-02 : f32
    %2 = vector.broadcast %cst_2 : f32 to vector<2x4xf32>
    %3 = arith.mulf %1, %2 : vector<2x4xf32>
    %cst_3 = arith.constant dense<0xFF800000> : vector<2x4xf32>
    %4 = vector.multi_reduction <maximumf>, %0, %cst_3 [2] : vector<2x4x16xf32> to vector<2x4xf32>
    %c0_4 = arith.constant 0 : index
    %c0_5 = arith.constant 0 : index
    %5 = vector.load %arg2[%c0_4, %c0_5] : memref<4x128xf32, #tpu.memory_space<vmem>>, vector<4x128xf32>
    %c0_6 = arith.constant 0 : index
    %c0_7 = arith.constant 0 : index
    %6 = vector.load %arg3[%c0_6, %c0_7] : memref<1x128xf32, #tpu.memory_space<vmem>>, vector<1x128xf32>
    %c0_8 = arith.constant 0 : index
    %c0_9 = arith.constant 0 : index
    %7 = vector.load %arg4[%c0_8, %c0_9] : memref<128x4xf32, #tpu.memory_space<vmem>>, vector<128x4xf32>
    %c0_10 = arith.constant 0 : index
    %c0_11 = arith.constant 0 : index
    %8 = vector.load %arg5[%c0_10, %c0_11] : memref<1x4xf32, #tpu.memory_space<vmem>>, vector<1x4xf32>
    %cst_12 = arith.constant dense<0.000000e+00> : vector<2x128xf32>
    %9 = tpu.matmul %3, %5, %cst_12 {dimension_numbers = #tpu.dot_dimension_numbers<[1], [0], [0], [1], [0, 0, 1, 1], [], []>, precision = #tpu.contract_precision<fp32>} : vector<2x4xf32>, vector<4x128xf32>, vector<2x128xf32> -> vector<2x128xf32>
    %10 = vector.broadcast %6 : vector<1x128xf32> to vector<2x128xf32>
    %11 = arith.addf %9, %10 : vector<2x128xf32>
    %cst_13 = arith.constant 0.000000e+00 : f32
    %12 = vector.broadcast %cst_13 : f32 to vector<2x128xf32>
    %13 = arith.maximumf %11, %12 : vector<2x128xf32>
    %cst_14 = arith.constant dense<0.000000e+00> : vector<2x4xf32>
    %14 = tpu.matmul %13, %7, %cst_14 {dimension_numbers = #tpu.dot_dimension_numbers<[1], [0], [0], [1], [0, 0, 1, 1], [], []>, precision = #tpu.contract_precision<fp32>} : vector<2x128xf32>, vector<128x4xf32>, vector<2x4xf32> -> vector<2x4xf32>
    %15 = vector.broadcast %8 : vector<1x4xf32> to vector<2x4xf32>
    %16 = arith.addf %14, %15 : vector<2x4xf32>
    %cst_15 = arith.constant dense<0.000000e+00> : vector<2x128xf32>
    %17 = tpu.matmul %4, %5, %cst_15 {dimension_numbers = #tpu.dot_dimension_numbers<[1], [0], [0], [1], [0, 0, 1, 1], [], []>, precision = #tpu.contract_precision<fp32>} : vector<2x4xf32>, vector<4x128xf32>, vector<2x128xf32> -> vector<2x128xf32>
    %18 = vector.broadcast %6 : vector<1x128xf32> to vector<2x128xf32>
    %19 = arith.addf %17, %18 : vector<2x128xf32>
    %cst_16 = arith.constant 0.000000e+00 : f32
    %20 = vector.broadcast %cst_16 : f32 to vector<2x128xf32>
    %21 = arith.maximumf %19, %20 : vector<2x128xf32>
    %cst_17 = arith.constant dense<0.000000e+00> : vector<2x4xf32>
    %22 = tpu.matmul %21, %7, %cst_17 {dimension_numbers = #tpu.dot_dimension_numbers<[1], [0], [0], [1], [0, 0, 1, 1], [], []>, precision = #tpu.contract_precision<fp32>} : vector<2x128xf32>, vector<128x4xf32>, vector<2x4xf32> -> vector<2x4xf32>
    %23 = vector.broadcast %8 : vector<1x4xf32> to vector<2x4xf32>
    %24 = arith.addf %22, %23 : vector<2x4xf32>
    %25 = arith.addf %16, %24 : vector<2x4xf32>
    %26 = arith.negf %25 : vector<2x4xf32>
    %27 = math.exp %26 : vector<2x4xf32>
    %cst_18 = arith.constant 1.000000e+00 : f32
    %28 = vector.broadcast %cst_18 : f32 to vector<2x4xf32>
    %29 = arith.addf %28, %27 : vector<2x4xf32>
    %30 = arith.divf %28, %29 : vector<2x4xf32>
    %31 = vector.shape_cast %30 : vector<2x4xf32> to vector<2x4x1xf32>
    %32 = vector.broadcast %31 : vector<2x4x1xf32> to vector<2x4x16xf32>
    %33 = arith.mulf %0, %32 : vector<2x4x16xf32>
    %cst_19 = arith.constant dense<0.000000e+00> : vector<2x16xf32>
    %34 = vector.multi_reduction <add>, %33, %cst_19 [1] : vector<2x4x16xf32> to vector<2x16xf32>
    %cst_20 = arith.constant 2.500000e-01 : f32
    %35 = vector.broadcast %cst_20 : f32 to vector<2x16xf32>
    %36 = arith.mulf %34, %35 : vector<2x16xf32>
    %cst_21 = arith.constant dense<0xFF800000> : vector<2x16xf32>
    %37 = vector.multi_reduction <maximumf>, %33, %cst_21 [1] : vector<2x4x16xf32> to vector<2x16xf32>
    %c0_22 = arith.constant 0 : index
    %c0_23 = arith.constant 0 : index
    %38 = vector.load %arg9[%c0_22, %c0_23] : memref<2x128xf32, #tpu.memory_space<vmem>>, vector<2x16xf32>
    tpu.vector_store %arg9[%c0_22, %c0_23], %36 {strides = array<i32>} : memref<2x128xf32, #tpu.memory_space<vmem>>, vector<2x16xf32>,
    %c0_24 = arith.constant 0 : index
    %c0_25 = arith.constant 0 : index
    %39 = vector.load %arg10[%c0_24, %c0_25] : memref<2x128xf32, #tpu.memory_space<vmem>>, vector<2x16xf32>
    tpu.vector_store %arg10[%c0_24, %c0_25], %37 {strides = array<i32>} : memref<2x128xf32, #tpu.memory_space<vmem>>, vector<2x16xf32>,
    %c0_26 = arith.constant 0 : index
    %c0_27 = arith.constant 0 : index
    %40 = vector.load %arg9[%c0_26, %c0_27] : memref<2x128xf32, #tpu.memory_space<vmem>>, vector<2x128xf32>
    %c0_28 = arith.constant 0 : index
    %c0_29 = arith.constant 0 : index
    %41 = vector.load %arg10[%c0_28, %c0_29] : memref<2x128xf32, #tpu.memory_space<vmem>>, vector<2x128xf32>
    %42 = tpu.iota {dimensions = array<i32: 1>} : vector<2x128xi32>
    %cst_30 = arith.constant 0.000000e+00 : f32
    %43 = vector.broadcast %cst_30 : f32 to vector<2x128xf32>
    %c0_31 = arith.constant 0 : index
    %c0_32 = arith.constant 0 : index
    %44 = memref.load %arg7[%c0_31, %c0_32] : memref<1x1xf32, #tpu.memory_space<smem>>
    %45 = vector.broadcast %44 : f32 to vector<2x128xf32>
    %46 = arith.addf %43, %45 : vector<2x128xf32>
    %c3_i32 = arith.constant 3 : i32
    %47 = tpu.dynamic_rotate %40 by %c3_i32 dim 1 : vector<2x128xf32>, i32 -> vector<2x128xf32>
    %c3_i32_33 = arith.constant 3 : i32
    %48 = tpu.dynamic_rotate %41 by %c3_i32_33 dim 1 : vector<2x128xf32>, i32 -> vector<2x128xf32>
    %c0_34 = arith.constant 0 : index
    %c0_35 = arith.constant 0 : index
    %49 = memref.load %arg6[%c0_34, %c0_35] : memref<2x7xf32, #tpu.memory_space<smem>>
    %50 = vector.broadcast %49 : f32 to vector<2x128xf32>
    %51 = arith.mulf %50, %47 : vector<2x128xf32>
    %c1 = arith.constant 1 : index
    %c0_36 = arith.constant 0 : index
    %52 = memref.load %arg6[%c1, %c0_36] : memref<2x7xf32, #tpu.memory_space<smem>>
    %53 = vector.broadcast %52 : f32 to vector<2x128xf32>
    %54 = arith.mulf %53, %48 : vector<2x128xf32>
    %55 = arith.addf %51, %54 : vector<2x128xf32>
    %c-3_i32 = arith.constant -3 : i32
    %56 = vector.broadcast %c-3_i32 : i32 to vector<2x128xi32>
    %57 = arith.addi %42, %56 : vector<2x128xi32>
    %c0_i32 = arith.constant 0 : i32
    %58 = vector.broadcast %c0_i32 : i32 to vector<2x128xi32>
    %59 = arith.cmpi sge, %57, %58 : vector<2x128xi32>
    %c-3_i32_37 = arith.constant -3 : i32
    %60 = vector.broadcast %c-3_i32_37 : i32 to vector<2x128xi32>
    %61 = arith.addi %42, %60 : vector<2x128xi32>
    %c16_i32 = arith.constant 16 : i32
    %62 = vector.broadcast %c16_i32 : i32 to vector<2x128xi32>
    %63 = arith.cmpi slt, %61, %62 : vector<2x128xi32>
    %64 = arith.andi %59, %63 : vector<2x128xi1>
    %cst_38 = arith.constant 0.000000e+00 : f32
    %65 = vector.broadcast %cst_38 : f32 to vector<2x128xf32>
    %66 = arith.select %64, %55, %65 : vector<2x128xi1>, vector<2x128xf32>
    %67 = arith.addf %46, %66 : vector<2x128xf32>
    %c2_i32 = arith.constant 2 : i32
    %68 = tpu.dynamic_rotate %40 by %c2_i32 dim 1 : vector<2x128xf32>, i32 -> vector<2x128xf32>
    %c2_i32_39 = arith.constant 2 : i32
    %69 = tpu.dynamic_rotate %41 by %c2_i32_39 dim 1 : vector<2x128xf32>, i32 -> vector<2x128xf32>
    %c0_40 = arith.constant 0 : index
    %c1_41 = arith.constant 1 : index
    %70 = memref.load %arg6[%c0_40, %c1_41] : memref<2x7xf32, #tpu.memory_space<smem>>
    %71 = vector.broadcast %70 : f32 to vector<2x128xf32>
    %72 = arith.mulf %71, %68 : vector<2x128xf32>
    %c1_42 = arith.constant 1 : index
    %c1_43 = arith.constant 1 : index
    %73 = memref.load %arg6[%c1_42, %c1_43] : memref<2x7xf32, #tpu.memory_space<smem>>
    %74 = vector.broadcast %73 : f32 to vector<2x128xf32>
    %75 = arith.mulf %74, %69 : vector<2x128xf32>
    %76 = arith.addf %72, %75 : vector<2x128xf32>
    %c-2_i32 = arith.constant -2 : i32
    %77 = vector.broadcast %c-2_i32 : i32 to vector<2x128xi32>
    %78 = arith.addi %42, %77 : vector<2x128xi32>
    %c0_i32_44 = arith.constant 0 : i32
    %79 = vector.broadcast %c0_i32_44 : i32 to vector<2x128xi32>
    %80 = arith.cmpi sge, %78, %79 : vector<2x128xi32>
    %c-2_i32_45 = arith.constant -2 : i32
    %81 = vector.broadcast %c-2_i32_45 : i32 to vector<2x128xi32>
    %82 = arith.addi %42, %81 : vector<2x128xi32>
    %c16_i32_46 = arith.constant 16 : i32
    %83 = vector.broadcast %c16_i32_46 : i32 to vector<2x128xi32>
    %84 = arith.cmpi slt, %82, %83 : vector<2x128xi32>
    %85 = arith.andi %80, %84 : vector<2x128xi1>
    %cst_47 = arith.constant 0.000000e+00 : f32
    %86 = vector.broadcast %cst_47 : f32 to vector<2x128xf32>
    %87 = arith.select %85, %76, %86 : vector<2x128xi1>, vector<2x128xf32>
    %88 = arith.addf %67, %87 : vector<2x128xf32>
    %c1_i32 = arith.constant 1 : i32
    %89 = tpu.dynamic_rotate %40 by %c1_i32 dim 1 : vector<2x128xf32>, i32 -> vector<2x128xf32>
    %c1_i32_48 = arith.constant 1 : i32
    %90 = tpu.dynamic_rotate %41 by %c1_i32_48 dim 1 : vector<2x128xf32>, i32 -> vector<2x128xf32>
    %c0_49 = arith.constant 0 : index
    %c2 = arith.constant 2 : index
    %91 = memref.load %arg6[%c0_49, %c2] : memref<2x7xf32, #tpu.memory_space<smem>>
    %92 = vector.broadcast %91 : f32 to vector<2x128xf32>
    %93 = arith.mulf %92, %89 : vector<2x128xf32>
    %c1_50 = arith.constant 1 : index
    %c2_51 = arith.constant 2 : index
    %94 = memref.load %arg6[%c1_50, %c2_51] : memref<2x7xf32, #tpu.memory_space<smem>>
    %95 = vector.broadcast %94 : f32 to vector<2x128xf32>
    %96 = arith.mulf %95, %90 : vector<2x128xf32>
    %97 = arith.addf %93, %96 : vector<2x128xf32>
    %c-1_i32 = arith.constant -1 : i32
    %98 = vector.broadcast %c-1_i32 : i32 to vector<2x128xi32>
    %99 = arith.addi %42, %98 : vector<2x128xi32>
    %c0_i32_52 = arith.constant 0 : i32
    %100 = vector.broadcast %c0_i32_52 : i32 to vector<2x128xi32>
    %101 = arith.cmpi sge, %99, %100 : vector<2x128xi32>
    %c-1_i32_53 = arith.constant -1 : i32
    %102 = vector.broadcast %c-1_i32_53 : i32 to vector<2x128xi32>
    %103 = arith.addi %42, %102 : vector<2x128xi32>
    %c16_i32_54 = arith.constant 16 : i32
    %104 = vector.broadcast %c16_i32_54 : i32 to vector<2x128xi32>
    %105 = arith.cmpi slt, %103, %104 : vector<2x128xi32>
    %106 = arith.andi %101, %105 : vector<2x128xi1>
    %cst_55 = arith.constant 0.000000e+00 : f32
    %107 = vector.broadcast %cst_55 : f32 to vector<2x128xf32>
    %108 = arith.select %106, %97, %107 : vector<2x128xi1>, vector<2x128xf32>
    %109 = arith.addf %88, %108 : vector<2x128xf32>
    %c0_56 = arith.constant 0 : index
    %c3 = arith.constant 3 : index
    %110 = memref.load %arg6[%c0_56, %c3] : memref<2x7xf32, #tpu.memory_space<smem>>
    %111 = vector.broadcast %110 : f32 to vector<2x128xf32>
    %112 = arith.mulf %111, %40 : vector<2x128xf32>
    %c1_57 = arith.constant 1 : index
    %c3_58 = arith.constant 3 : index
    %113 = memref.load %arg6[%c1_57, %c3_58] : memref<2x7xf32, #tpu.memory_space<smem>>
    %114 = vector.broadcast %113 : f32 to vector<2x128xf32>
    %115 = arith.mulf %114, %41 : vector<2x128xf32>
    %116 = arith.addf %112, %115 : vector<2x128xf32>
    %c0_i32_59 = arith.constant 0 : i32
    %117 = vector.broadcast %c0_i32_59 : i32 to vector<2x128xi32>
    %118 = arith.addi %42, %117 : vector<2x128xi32>
    %c0_i32_60 = arith.constant 0 : i32
    %119 = vector.broadcast %c0_i32_60 : i32 to vector<2x128xi32>
    %120 = arith.cmpi sge, %118, %119 : vector<2x128xi32>
    %c0_i32_61 = arith.constant 0 : i32
    %121 = vector.broadcast %c0_i32_61 : i32 to vector<2x128xi32>
    %122 = arith.addi %42, %121 : vector<2x128xi32>
    %c16_i32_62 = arith.constant 16 : i32
    %123 = vector.broadcast %c16_i32_62 : i32 to vector<2x128xi32>
    %124 = arith.cmpi slt, %122, %123 : vector<2x128xi32>
    %125 = arith.andi %120, %124 : vector<2x128xi1>
    %cst_63 = arith.constant 0.000000e+00 : f32
    %126 = vector.broadcast %cst_63 : f32 to vector<2x128xf32>
    %127 = arith.select %125, %116, %126 : vector<2x128xi1>, vector<2x128xf32>
    %128 = arith.addf %109, %127 : vector<2x128xf32>
    %c127_i32 = arith.constant 127 : i32
    %129 = tpu.dynamic_rotate %40 by %c127_i32 dim 1 : vector<2x128xf32>, i32 -> vector<2x128xf32>
    %c127_i32_64 = arith.constant 127 : i32
    %130 = tpu.dynamic_rotate %41 by %c127_i32_64 dim 1 : vector<2x128xf32>, i32 -> vector<2x128xf32>
    %c0_65 = arith.constant 0 : index
    %c4 = arith.constant 4 : index
    %131 = memref.load %arg6[%c0_65, %c4] : memref<2x7xf32, #tpu.memory_space<smem>>
    %132 = vector.broadcast %131 : f32 to vector<2x128xf32>
    %133 = arith.mulf %132, %129 : vector<2x128xf32>
    %c1_66 = arith.constant 1 : index
    %c4_67 = arith.constant 4 : index
    %134 = memref.load %arg6[%c1_66, %c4_67] : memref<2x7xf32, #tpu.memory_space<smem>>
    %135 = vector.broadcast %134 : f32 to vector<2x128xf32>
    %136 = arith.mulf %135, %130 : vector<2x128xf32>
    %137 = arith.addf %133, %136 : vector<2x128xf32>
    %c1_i32_68 = arith.constant 1 : i32
    %138 = vector.broadcast %c1_i32_68 : i32 to vector<2x128xi32>
    %139 = arith.addi %42, %138 : vector<2x128xi32>
    %c0_i32_69 = arith.constant 0 : i32
    %140 = vector.broadcast %c0_i32_69 : i32 to vector<2x128xi32>
    %141 = arith.cmpi sge, %139, %140 : vector<2x128xi32>
    %c1_i32_70 = arith.constant 1 : i32
    %142 = vector.broadcast %c1_i32_70 : i32 to vector<2x128xi32>
    %143 = arith.addi %42, %142 : vector<2x128xi32>
    %c16_i32_71 = arith.constant 16 : i32
    %144 = vector.broadcast %c16_i32_71 : i32 to vector<2x128xi32>
    %145 = arith.cmpi slt, %143, %144 : vector<2x128xi32>
    %146 = arith.andi %141, %145 : vector<2x128xi1>
    %cst_72 = arith.constant 0.000000e+00 : f32
    %147 = vector.broadcast %cst_72 : f32 to vector<2x128xf32>
    %148 = arith.select %146, %137, %147 : vector<2x128xi1>, vector<2x128xf32>
    %149 = arith.addf %128, %148 : vector<2x128xf32>
    %c126_i32 = arith.constant 126 : i32
    %150 = tpu.dynamic_rotate %40 by %c126_i32 dim 1 : vector<2x128xf32>, i32 -> vector<2x128xf32>
    %c126_i32_73 = arith.constant 126 : i32
    %151 = tpu.dynamic_rotate %41 by %c126_i32_73 dim 1 : vector<2x128xf32>, i32 -> vector<2x128xf32>
    %c0_74 = arith.constant 0 : index
    %c5 = arith.constant 5 : index
    %152 = memref.load %arg6[%c0_74, %c5] : memref<2x7xf32, #tpu.memory_space<smem>>
    %153 = vector.broadcast %152 : f32 to vector<2x128xf32>
    %154 = arith.mulf %153, %150 : vector<2x128xf32>
    %c1_75 = arith.constant 1 : index
    %c5_76 = arith.constant 5 : index
    %155 = memref.load %arg6[%c1_75, %c5_76] : memref<2x7xf32, #tpu.memory_space<smem>>
    %156 = vector.broadcast %155 : f32 to vector<2x128xf32>
    %157 = arith.mulf %156, %151 : vector<2x128xf32>
    %158 = arith.addf %154, %157 : vector<2x128xf32>
    %c2_i32_77 = arith.constant 2 : i32
    %159 = vector.broadcast %c2_i32_77 : i32 to vector<2x128xi32>
    %160 = arith.addi %42, %159 : vector<2x128xi32>
    %c0_i32_78 = arith.constant 0 : i32
    %161 = vector.broadcast %c0_i32_78 : i32 to vector<2x128xi32>
    %162 = arith.cmpi sge, %160, %161 : vector<2x128xi32>
    %c2_i32_79 = arith.constant 2 : i32
    %163 = vector.broadcast %c2_i32_79 : i32 to vector<2x128xi32>
    %164 = arith.addi %42, %163 : vector<2x128xi32>
    %c16_i32_80 = arith.constant 16 : i32
    %165 = vector.broadcast %c16_i32_80 : i32 to vector<2x128xi32>
    %166 = arith.cmpi slt, %164, %165 : vector<2x128xi32>
    %167 = arith.andi %162, %166 : vector<2x128xi1>
    %cst_81 = arith.constant 0.000000e+00 : f32
    %168 = vector.broadcast %cst_81 : f32 to vector<2x128xf32>
    %169 = arith.select %167, %158, %168 : vector<2x128xi1>, vector<2x128xf32>
    %170 = arith.addf %149, %169 : vector<2x128xf32>
    %c125_i32 = arith.constant 125 : i32
    %171 = tpu.dynamic_rotate %40 by %c125_i32 dim 1 : vector<2x128xf32>, i32 -> vector<2x128xf32>
    %c125_i32_82 = arith.constant 125 : i32
    %172 = tpu.dynamic_rotate %41 by %c125_i32_82 dim 1 : vector<2x128xf32>, i32 -> vector<2x128xf32>
    %c0_83 = arith.constant 0 : index
    %c6 = arith.constant 6 : index
    %173 = memref.load %arg6[%c0_83, %c6] : memref<2x7xf32, #tpu.memory_space<smem>>
    %174 = vector.broadcast %173 : f32 to vector<2x128xf32>
    %175 = arith.mulf %174, %171 : vector<2x128xf32>
    %c1_84 = arith.constant 1 : index
    %c6_85 = arith.constant 6 : index
    %176 = memref.load %arg6[%c1_84, %c6_85] : memref<2x7xf32, #tpu.memory_space<smem>>
    %177 = vector.broadcast %176 : f32 to vector<2x128xf32>
    %178 = arith.mulf %177, %172 : vector<2x128xf32>
    %179 = arith.addf %175, %178 : vector<2x128xf32>
    %c3_i32_86 = arith.constant 3 : i32
    %180 = vector.broadcast %c3_i32_86 : i32 to vector<2x128xi32>
    %181 = arith.addi %42, %180 : vector<2x128xi32>
    %c0_i32_87 = arith.constant 0 : i32
    %182 = vector.broadcast %c0_i32_87 : i32 to vector<2x128xi32>
    %183 = arith.cmpi sge, %181, %182 : vector<2x128xi32>
    %c3_i32_88 = arith.constant 3 : i32
    %184 = vector.broadcast %c3_i32_88 : i32 to vector<2x128xi32>
    %185 = arith.addi %42, %184 : vector<2x128xi32>
    %c16_i32_89 = arith.constant 16 : i32
    %186 = vector.broadcast %c16_i32_89 : i32 to vector<2x128xi32>
    %187 = arith.cmpi slt, %185, %186 : vector<2x128xi32>
    %188 = arith.andi %183, %187 : vector<2x128xi1>
    %cst_90 = arith.constant 0.000000e+00 : f32
    %189 = vector.broadcast %cst_90 : f32 to vector<2x128xf32>
    %190 = arith.select %188, %179, %189 : vector<2x128xi1>, vector<2x128xf32>
    %191 = arith.addf %170, %190 : vector<2x128xf32>
    %192 = vector.extract_strided_slice %191 {offsets = [0, 0], sizes = [2, 16], strides = [1, 1]} : vector<2x128xf32> to vector<2x16xf32>
    %193 = arith.negf %192 : vector<2x16xf32>
    %194 = math.exp %193 : vector<2x16xf32>
    %cst_91 = arith.constant 1.000000e+00 : f32
    %195 = vector.broadcast %cst_91 : f32 to vector<2x16xf32>
    %196 = arith.addf %195, %194 : vector<2x16xf32>
    %197 = arith.divf %195, %196 : vector<2x16xf32>
    %198 = vector.shape_cast %197 : vector<2x16xf32> to vector<2x1x16xf32>
    %199 = vector.broadcast %198 : vector<2x1x16xf32> to vector<2x4x16xf32>
    %200 = arith.mulf %33, %199 : vector<2x4x16xf32>
    %c0_92 = arith.constant 0 : index
    %c0_93 = arith.constant 0 : index
    %c0_94 = arith.constant 0 : index
    %201 = vector.load %arg8[%c0_92, %c0_93, %c0_94] : memref<2x4x16xf32, #tpu.memory_space<vmem>>, vector<2x4x16xf32>
    tpu.vector_store %arg8[%c0_92, %c0_93, %c0_94], %200 {strides = array<i32>} : memref<2x4x16xf32, #tpu.memory_space<vmem>>, vector<2x4x16xf32>,
    return
  }
  func.func @transform_0(%arg0: i32) -> (i32, i32, i32) {
    %c0_i32 = arith.constant 0 : i32
    %c0_i32_0 = arith.constant 0 : i32
    %c0_i32_1 = arith.constant 0 : i32
    return %arg0, %c0_i32, %c0_i32_0 : i32, i32, i32
  }
  func.func @transform_1(%arg0: i32) -> (i32, i32) {
    %c0_i32 = arith.constant 0 : i32
    %c0_i32_0 = arith.constant 0 : i32
    %c0_i32_1 = arith.constant 0 : i32
    return %c0_i32, %c0_i32_0 : i32, i32
  }
  func.func @transform_2(%arg0: i32) -> (i32, i32) {
    %c0_i32 = arith.constant 0 : i32
    %c0_i32_0 = arith.constant 0 : i32
    %c0_i32_1 = arith.constant 0 : i32
    return %c0_i32, %c0_i32_0 : i32, i32
  }
  func.func @transform_3(%arg0: i32) -> (i32, i32) {
    %c0_i32 = arith.constant 0 : i32
    %c0_i32_0 = arith.constant 0 : i32
    %c0_i32_1 = arith.constant 0 : i32
    return %c0_i32, %c0_i32_0 : i32, i32
  }
  func.func @transform_4(%arg0: i32) -> (i32, i32) {
    %c0_i32 = arith.constant 0 : i32
    %c0_i32_0 = arith.constant 0 : i32
    %c0_i32_1 = arith.constant 0 : i32
    return %c0_i32, %c0_i32_0 : i32, i32
  }
  func.func @transform_5(%arg0: i32) -> (i32, i32) {
    %c0_i32 = arith.constant 0 : i32
    %c0_i32_0 = arith.constant 0 : i32
    %c0_i32_1 = arith.constant 0 : i32
    return %c0_i32, %c0_i32_0 : i32, i32
  }
  func.func @transform_6(%arg0: i32) -> (i32, i32) {
    %c0_i32 = arith.constant 0 : i32
    %c0_i32_0 = arith.constant 0 : i32
    %c0_i32_1 = arith.constant 0 : i32
    return %c0_i32, %c0_i32_0 : i32, i32
  }
  func.func @transform_7(%arg0: i32) -> (i32, i32, i32) {
    %c0_i32 = arith.constant 0 : i32
    %c0_i32_0 = arith.constant 0 : i32
    %c0_i32_1 = arith.constant 0 : i32
    return %arg0, %c0_i32, %c0_i32_0 : i32, i32, i32
  }
}

</mosaic_0001>

<bundles_post_ra>
// kernel: tpu_custom_call.1
= control target key start
LH: loop header
LB: loop body
LE: loop exit
PB: predicated region body
PF: predicated region fallthrough
CT: control target
= control target key end

     0   :  { %13 = vsyncpa [#allocation7], 0  ;;  %s4249_s0 = inlined_call_operand.vmem [shape: f32[2,4,16], index: 0, kind: input, shape index: {}]   ;;  %s4250_s1 = inlined_call_operand.vmem [shape: f32[4,128], index: 1, kind: input, shape index: {}]   ;;  %s4251_s2 = inlined_call_operand.vmem [shape: f32[1,128], index: 2, kind: input, shape index: {}]   ;;  %s4252_s3 = inlined_call_operand.vmem [shape: f32[128,4], index: 3, kind: input, shape index: {}]   ;;  %s4253_s4 = inlined_call_operand.vmem [shape: f32[1,4], index: 4, kind: input, shape index: {}]   ;;  %s4254_s5 = inlined_call_operand.vmem [shape: f32[2,7], index: 5, kind: input, shape index: {}]   ;;  %s4255_s6 = inlined_call_operand.<no memory space> [shape: f32[1,1], index: 6, kind: input, shape index: {}]   ;;  %s4256_s7 = inlined_call_operand.hbm [shape: f32[2,4,16], index: 7, kind: output, shape index: {}]  }
   0x1   :  { %14 = vsyncpa [#allocation6], 0  ;;  %s31_s26 = sshll.u32 %s4254_s5, 4  ;;  %s32_s26 = int_to_ptr.vmem [resolvable:$true] %s31_s26 }
   0x2   :  { %s3290_s27 = scalar_lea.vmem %s32_s26, 32  ;;  %p3295_p1 = scmp.lt.s32.totalorder %s32_s26, %s32_s26 }
   0x3   :  { %p3291_p0 = scmp.ne.s32.totalorder %s32_s26, %s3290_s27  ;;  %p3296_p2 = scmp.lt.s32.totalorder %s3290_s27, %s3290_s27 }
   0x5   :  { %p3297_p3 = por %p3296_p2, %p3295_p1 }
   0x7   :  { %p3298_p4 = pnand %p3297_p3, %p3291_p0 }
   0x9   :  { %3301 = shalt.err (!%p3298_p4)
}
   0xa   :  { %s3326_s28 = smov [#allocation5]  }
   0xb   :  { %34 = dma.vmem_to_smem %s32_s26, 32, %s3326_s28, [#allocation7]  }
   0xc   :  { %3322 = dma.done.wait [#allocation7], 32  }
   0xd   :  { %3323 = vsyncadd [#allocation7], 4294967264 }
   0xe   :  { %40 = sfence }
   0xf   :  { %v41_v0 = vld [vmem:[%s4249_s0] sm:$0xf]  ;;  %vm43_vm0 = vcmask 125952   ;;  %v42_v1 = vld [vmem:[%s4249_s0 + $0x4] sm:$0xf]  ;;  %vm100_vm1 = vcmask 1043456   ;;  %v85_v14 = vlaneseq }
  0x10   :  { %v44_v2 = vsel %vm43_vm0, %v41_v0, 0.0  ;;  %v47_v3 = vsel %vm43_vm0, %v42_v1, 0.0  ;;  %v58_v4 = vld [vmem:[%s4250_s1] sm:$0xf]  ;;  %v4283_v11 = vmov 0.0   ;;  %vm3328_vm2 = vmmov 0  }
  0x11   :  { %45 = vadd.xlane.f32.xlu0 %v44_v2  ;;  %v102_v5 = vsel %vm100_vm1, %v58_v4, 0  ;;  %2792 = vmatprep.subr.mxu1 %v4283_v11  ;;  %v52_v12 = vsel %vm43_vm0, %v41_v0, -inf  ;;  %v55_v13 = vsel %vm43_vm0, %v42_v1, -inf  ;;  %v3417_v15 = vand.u32 127, %v85_v14  ;;  %v75_v18 = vld [vmem:[%s4252_s3 + $0x78] sm:$0xff]  ;;  %v74_v19 = vld [vmem:[%s4252_s3 + $0x70] sm:$0xff] }
  0x12   :  { %v3393_v6 = vand.u32 4294901760, %v102_v5  ;;  %2794 = vmatprep.mubr.msk.f32.mxu1 %vm3328_vm2, %v4283_v11  ;;  %2787 = vmatprep.subr.mxu0 %v4283_v11  ;;  %v3419_v16 = vshrl.u32 %v85_v14, 7  ;;  %v3431_v22 = vand.u32 4294901760, %v75_v18  ;;  %v3433_v25 = vand.u32 4294901760, %v74_v19  ;;  %v73_v26 = vld [vmem:[%s4252_s3 + $0x68] sm:$0xff]  ;;  %v72_v30 = vld [vmem:[%s4252_s3 + $0x60] sm:$0xff] }
  0x13   :  { %2789 = vmatprep.mubr.msk.f32.mxu0 %vm3328_vm2, %v4283_v11  ;;  %53 = vmax.xlane.f32.xlu1 %v52_v12  ;;  %4302 = vst [vmem:[#allocation15_spill] sm:$0xff] %v3417_v15  ;;  %vm95_vm3 = vcmask 1041409   ;;  %vm97_vm4 = vcmask 31744   ;;  %v3446_v31 = vand.u32 4294901760, %v73_v26  ;;  %v3453_v35 = vand.u32 4294901760, %v72_v30  ;;  %v71_v55 = vld [vmem:[%s4252_s3 + $0x58] sm:$0xff] }
  0x14   :  { %4298 = vst [vmem:[#allocation11_spill] sm:$0xff] %v3393_v6  ;;  %v3396_v7 = vsub.f32 %v102_v5, %v3393_v6  ;;  %2788 = vmatpush3.msra.mxu0 %v3393_v6  ;;  %4303 = vst [vmem:[#allocation16_spill] sm:$0xff] %v3419_v16  ;;  %v3429_v20 = vsub.s32 %v3417_v15, %v3419_v16  ;;  %v3441_v29 = vsub.f32 %v75_v18, %v3431_v22  ;;  %v70_v57 = vld [vmem:[%s4252_s3 + $0x50] sm:$0xff]  ;;  %v69_v60 = vld [vmem:[%s4252_s3 + $0x48] sm:$0xff]  ;;  %vm2356_vm5 = vcmask 123904   ;;  %s2550_s22 = sld [smem:[#allocation5 + $0x3]] }
  0x15   :  { %48 = vadd.xlane.f32.xlu0 %v47_v3  ;;  %2797 = vmatprep.subr.mxu0 %v4283_v11  ;;  %v3450_v33 = vsub.f32 %v74_v19, %v3433_v25  ;;  %v3459_v38 = vsub.f32 %v73_v26, %v3446_v31  ;;  %v3468_v41 = vsub.f32 %v72_v30, %v3453_v35  ;;  %v3528_v56 = vand.u32 4294901760, %v71_v55  ;;  %v68_v0 = vld [vmem:[%s4252_s3 + $0x40] sm:$0xff]  ;;  %v67_v5 = vld [vmem:[%s4252_s3 + $0x38] sm:$0xff]  ;;  %v66_v18 = vld [vmem:[%s4252_s3 + $0x30] sm:$0xff]  ;;  %s3329_s23 = smov 3   ;;  %s3330_s24 = smov 2  }
  0x16   :  { %4299 = vst [vmem:[#allocation12_spill] sm:$0xff] %v3396_v7  ;;  %v3399_v8 = vand.u32 4294901760, %v3396_v7  ;;  %v3456_v37 = vand.u32 4294901760, %v3441_v29  ;;  %v3536_v59 = vand.u32 4294901760, %v70_v57  ;;  %v3549_v63 = vand.u32 4294901760, %v69_v60  ;;  %s3331_s25 = smov 1  }
  0x17   :  { %56 = vmax.xlane.f32.xlu1 %v55_v13  ;;  %v3462_v40 = vand.u32 4294901760, %v3450_v33  ;;  %v3474_v44 = vand.u32 4294901760, %v3459_v38  ;;  %v3482_v47 = vand.u32 4294901760, %v3468_v41  ;;  %v3534_v58 = vsub.f32 %v71_v55, %v3528_v56  ;;  %s3332_s26 = smov 127   ;;  %s3333_s27 = smov 126  }
  0x18   :  { %4300 = vst [vmem:[#allocation13_spill] sm:$0xff] %v3399_v8  ;;  %v214_v9 = vsub.f32 %v3396_v7, %v3399_v8  ;;  %v652_v43 = vsub.f32 %v3441_v29, %v3456_v37  ;;  %v3547_v62 = vsub.f32 %v70_v57, %v3536_v59  ;;  %v3562_v3 = vsub.f32 %v69_v60, %v3549_v63  ;;  %s3334_s28 = smov 125   ;;  %s4185_s29 = sld [smem:[#allocation5 + $0x80]] }
  0x19   :  { %v659_v46 = vsub.f32 %v3450_v33, %v3462_v40  ;;  %v666_v50 = vsub.f32 %v3459_v38, %v3474_v44  ;;  %v673_v52 = vsub.f32 %v3468_v41, %v3482_v47  ;;  %v3544_v61 = vand.u32 4294901760, %v3534_v58  ;;  %s4187_s30 = sld [smem:[#allocation5 + $0x1]] }
  0x1a   :  { %v3403_v10 = vand.u32 4294901760, %v214_v9  ;;  %v3485_v49 = vand.u32 4294901760, %v652_v43  ;;  %v3559_v2 = vand.u32 4294901760, %v3547_v62  ;;  %v3564_v4 = vand.u32 4294901760, %v68_v0  ;;  %s2547_s8 = sld [smem:[#allocation5 + $0x81]] }
  0x1b   :  { %v3489_v51 = vand.u32 4294901760, %v659_v46  ;;  %v3499_v53 = vand.u32 4294901760, %v666_v50  ;;  %v3507_v54 = vand.u32 4294901760, %v673_v52  ;;  %v680_v1 = vsub.f32 %v3534_v58, %v3544_v61  ;;  %v63_v50 = vld [vmem:[%s4252_s3 + $0x18] sm:$0xff]  ;;  %s2549_s5 = sld [smem:[#allocation5 + $0x82]] }
  0x1c   :  { %4301 = vst [vmem:[#allocation14_spill] sm:$0xff] %v3403_v10  ;;  %2793 = vmatpush3.msra.mxu1 %v3403_v10  ;;  %4304 = vst [vmem:[#allocation17_spill] sm:$0xff] %v3485_v49  ;;  %v687_v12 = vsub.f32 %v3547_v62, %v3559_v2  ;;  %v3576_v13 = vand.u32 4294901760, %v3562_v3  ;;  %v3579_v14 = vsub.f32 %v68_v0, %v3564_v4  ;;  %v3653_v60 = vand.u32 4294901760, %v63_v50  ;;  %s2372_s9 = sld [smem:[#allocation5]] }
  0x1d   :  { %2802 = vmatprep.subr.mxu1 %v4283_v11  ;;  %4305 = vst [vmem:[#allocation18_spill] sm:$0xff] %v3489_v51  ;;  %4306 = vst [vmem:[#allocation19_spill] sm:$0xff] %v3499_v53  ;;  %v3571_v9 = vand.u32 4294901760, %v680_v1  ;;  %v62_v1 = vld [vmem:[%s4252_s3 + $0x10] sm:$0xff]  ;;  %s4189_s10 = sld [smem:[#allocation5 + $0x2]] }
  0x1e   :  { %4307 = vst [vmem:[#allocation20_spill] sm:$0xff] %v3507_v54  ;;  %v3589_v19 = vand.u32 4294901760, %v687_v12  ;;  %s4191_s1 = sld [smem:[#allocation5 + $0x84]] }
  0x1f   :  { %4308 = vst [vmem:[#allocation21_spill] sm:$0xff] %v3571_v9  ;;  %s4195_s11 = sld [smem:[#allocation5 + $0x4]] }
  0x20   :  { %4309 = vst [vmem:[#allocation22_spill] sm:$0xff] %v3589_v19  ;;  %s4198_s12 = sld [smem:[#allocation5 + $0x5]] }
  0x21   :  { %s4202_s13 = sld [smem:[#allocation5 + $0x85]] }
  0x22   :  { %s4205_s14 = sld [smem:[#allocation5 + $0x6]] }
  0x23   :  { %s4212_s15 = sld [smem:[#allocation5 + $0x86]] }
  0x9a   :  { %v46_v17 = vpop.xlane.xlu0 %45 }
  0x9b   :  { %v50_v21 = vmul.f32 0.0625, %v46_v17  ;;  %v3582_v17 = vand.u32 4294901760, %v67_v5 }
  0x9d   :  { %v90_v27 = vrot.slane %v50_v21, %v3429_v20  ;;  %v694_v21 = vsub.f32 %v3562_v3, %v3576_v13  ;;  %v3600_v26 = vsub.f32 %v67_v5, %v3582_v17 }
  0x9e   :  { %v49_v23 = vpop.xlane.xlu0 %48 }
  0x9f   :  { %v51_v24 = vmul.f32 0.0625, %v49_v23  ;;  %v3594_v23 = vand.u32 4294901760, %v3579_v14 }
  0xa1   :  { %v94_v28 = vrot.slane %v51_v24, %v3429_v20  ;;  %v3596_v24 = vand.u32 4294901760, %v66_v18  ;;  %v701_v30 = vsub.f32 %v3579_v14, %v3594_v23 }
  0xa3   :  { %v96_v32 = vsel %vm95_vm3, %v94_v28, %v90_v27  ;;  %v65_v27 = vld [vmem:[%s4252_s3 + $0x28] sm:$0xff]  ;;  %v3607_v28 = vand.u32 4294901760, %v694_v21  ;;  %v3671_v21 = vsub.f32 %v63_v50, %v3653_v60 }
  0xa4   :  { %v98_v34 = vsel %vm97_vm4, %v96_v32, 0  ;;  %v3612_v32 = vsub.f32 %v66_v18, %v3596_v24 }
  0xa5   :  { %v170_v36 = vand.u32 4294901760, %v98_v34  ;;  %4310 = vst [vmem:[#allocation23_spill] sm:$0xff] %v3607_v28  ;;  %v3687_v50 = vand.u32 4294901760, %v3671_v21 }
  0xa6   :  { %v3629_v43 = vand.u32 4294901760, %v3612_v32 }
  0xa7   :  { %2795 = vmatmul.mubr.f32.vlgmr.msra.gmra.mxu1 %v170_v36  ;;  %v171_v39 = vsub.f32 %v98_v34, %v170_v36  ;;  %v3614_v34 = vand.u32 4294901760, %v65_v27  ;;  %4319 = vst [vmem:[#allocation32_spill] sm:$0xff] %v3687_v50 }
  0xa8   :  { %2803 = vmatpush3.msra.mxu1 %v3393_v6  ;;  %2804 = vmatprep.mubr.msk.f32.mxu1 %vm3328_vm2, %v4283_v11  ;;  %4313 = vst [vmem:[#allocation26_spill] sm:$0xff] %v3629_v43  ;;  %v715_v52 = vsub.f32 %v3612_v32, %v3629_v43 }
  0xa9   :  { %v172_v42 = vand.u32 4294901760, %v171_v39  ;;  %2812 = vmatprep.subr.mxu1 %v4283_v11 }
  0xaa   :  { %v3663_v5 = vand.u32 4294901760, %v715_v52 }
  0xab   :  { %2805 = vmatmul.mubr.f32.vlgmr.msra.gmra.mxu1 %v172_v42  ;;  %v173_v45 = vsub.f32 %v171_v39, %v172_v42  ;;  %v3626_v42 = vand.u32 4294901760, %v701_v30  ;;  %v61_v30 = vld [vmem:[%s4252_s3 + $0x8] sm:$0xff] }
  0xac   :  { %2813 = vmatpush3.msra.mxu1 %v3393_v6  ;;  %2814 = vmatprep.mubr.msk.f32.mxu1 %vm3328_vm2, %v4283_v11  ;;  %4316 = vst [vmem:[#allocation29_spill] sm:$0xff] %v3663_v5  ;;  %v3689_v52 = vand.u32 4294901760, %v61_v30 }
  0xad   :  { %v174_v48 = vand.u32 4294901760, %v173_v45  ;;  %2852 = vmatprep.subr.mxu1 %v4283_v11  ;;  %4312 = vst [vmem:[#allocation25_spill] sm:$0xff] %v3626_v42  ;;  %v3632_v45 = vsub.f32 %v65_v27, %v3614_v34  ;;  %v3675_v27 = vand.u32 4294901760, %v62_v1 }
  0xaf   :  { %2790 = vmatmul.mubr.f32.vlgmr.msra.gmra.mxu0 %v174_v48  ;;  %2815 = vmatmul.mubr.f32.vlgmr.msra.gmra.mxu1 %v170_v36  ;;  %v3648_v55 = vand.u32 4294901760, %v3632_v45  ;;  %v3694_v15 = vsub.f32 %v62_v1, %v3675_v27 }
  0xb0   :  { %2798 = vmatpush3.msra.mxu0 %v3396_v7  ;;  %2799 = vmatprep.mubr.msk.f32.mxu0 %vm3328_vm2, %v4283_v11 }
  0xb1   :  { %2807 = vmatprep.subr.mxu0 %v4283_v11  ;;  %2853 = vmatpush3.msra.mxu1 %v3485_v49  ;;  %4314 = vst [vmem:[#allocation27_spill] sm:$0xff] %v3648_v55  ;;  %v722_v12 = vsub.f32 %v3632_v45, %v3648_v55  ;;  %v3713_v1 = vand.u32 4294901760, %v3694_v15 }
  0xb2   :  { %2854 = vmatprep.subr.mxu1 %v4283_v11  ;;  %2884 = vmatprep.mubr.msk.f32.mxu1 %vm3328_vm2, %v4283_v11 }
  0xb3   :  { %2800 = vmatmul.mubr.f32.vlgmr.msra.gmra.mxu0 %v171_v39  ;;  %2855 = vmatpush3.msra.mxu1 %v3489_v51  ;;  %v64_v39 = vld [vmem:[%s4252_s3 + $0x20] sm:$0xff]  ;;  %4321 = vst [vmem:[#allocation34_spill] sm:$0xff] %v3713_v1 }
  0xb4   :  { %2808 = vmatpush3.msra.mxu0 %v3399_v8  ;;  %2809 = vmatprep.mubr.msk.f32.mxu0 %vm3328_vm2, %v4283_v11  ;;  %v3634_v46 = vand.u32 4294901760, %v64_v39 }
  0xb5   :  { %2856 = vmatprep.subr.mxu1 %v4283_v11  ;;  %2817 = vmatprep.subr.mxu0 %v4283_v11 }
  0xb6   :  { %2857 = vmatpush3.msra.mxu1 %v3499_v53  ;;  %v3651_v57 = vsub.f32 %v64_v39, %v3634_v46  ;;  %v3682_v39 = vand.u32 4294901760, %v722_v12  ;;  %v60_v12 = vld [vmem:[%s4252_s3] sm:$0xff] }
  0xb7   :  { %2810 = vmatmul.mubr.f32.vlgmr.msra.gmra.mxu0 %v170_v36  ;;  %2858 = vmatprep.subr.mxu1 %v4283_v11  ;;  %v3619_v36 = vand.u32 4294901760, %v3600_v26 }
  0xb8   :  { %2859 = vmatpush3.msra.mxu1 %v3507_v54  ;;  %2818 = vmatpush3.msra.mxu0 %v3431_v22  ;;  %v3668_v18 = vand.u32 4294901760, %v3651_v57  ;;  %4318 = vst [vmem:[#allocation31_spill] sm:$0xff] %v3682_v39 }
  0xb9   :  { %2860 = vmatprep.subr.mxu1 %v4283_v11  ;;  %2819 = vmatprep.subr.mxu0 %v4283_v11  ;;  %4311 = vst [vmem:[#allocation24_spill] sm:$0xff] %v3619_v36  ;;  %v708_v48 = vsub.f32 %v3600_v26, %v3619_v36 }
  0xba   :  { %2820 = vmatpush3.msra.mxu0 %v3433_v25  ;;  %2849 = vmatprep.mubr.msk.f32.mxu0 %vm3328_vm2, %v4283_v11  ;;  %4317 = vst [vmem:[#allocation30_spill] sm:$0xff] %v3668_v18 }
  0xbb   :  { %2821 = vmatprep.subr.mxu0 %v4283_v11  ;;  %2861 = vmatpush3.msra.mxu1 %v3571_v9  ;;  %v3657_v0 = vand.u32 4294901760, %v708_v48  ;;  %v729_v48 = vsub.f32 %v3651_v57, %v3668_v18 }
  0xbc   :  { %2822 = vmatpush3.msra.mxu0 %v3446_v31  ;;  %2862 = vmatprep.subr.mxu1 %v4283_v11 }
  0xbd   :  { %2823 = vmatprep.subr.mxu0 %v4283_v11  ;;  %2863 = vmatpush3.msra.mxu1 %v3589_v19  ;;  %4315 = vst [vmem:[#allocation28_spill] sm:$0xff] %v3657_v0  ;;  %v3701_v16 = vand.u32 4294901760, %v729_v48 }
  0xbe   :  { %2824 = vmatpush3.msra.mxu0 %v3453_v35  ;;  %2864 = vmatprep.subr.mxu1 %v4283_v11 }
  0xbf   :  { %2825 = vmatprep.subr.mxu0 %v4283_v11  ;;  %2865 = vmatpush3.msra.mxu1 %v3607_v28  ;;  %4320 = vst [vmem:[#allocation33_spill] sm:$0xff] %v3701_v16 }
  0xc0   :  { %2826 = vmatpush3.msra.mxu0 %v3528_v56  ;;  %2866 = vmatprep.subr.mxu1 %v4283_v11 }
  0xc1   :  { %2827 = vmatprep.subr.mxu0 %v4283_v11  ;;  %2867 = vmatpush3.msra.mxu1 %v3626_v42  ;;  %v3706_v42 = vsub.f32 %v61_v30, %v3689_v52 }
  0xc2   :  { %2828 = vmatpush3.msra.mxu0 %v3536_v59  ;;  %2868 = vmatprep.subr.mxu1 %v4283_v11 }
  0xc3   :  { %2829 = vmatprep.subr.mxu0 %v4283_v11  ;;  %2869 = vmatpush3.msra.mxu1 %v3657_v0  ;;  %v736_v0 = vsub.f32 %v3671_v21, %v3687_v50  ;;  %v3720_v28 = vand.u32 4294901760, %v3706_v42 }
  0xc4   :  { %2830 = vmatpush3.msra.mxu0 %v3549_v63  ;;  %2870 = vmatprep.subr.mxu1 %v4283_v11 }
  0xc5   :  { %2831 = vmatprep.subr.mxu0 %v4283_v11  ;;  %2871 = vmatpush3.msra.mxu1 %v3663_v5  ;;  %v3708_v5 = vand.u32 4294901760, %v60_v12  ;;  %v3717_v48 = vand.u32 4294901760, %v736_v0  ;;  %4323 = vst [vmem:[#allocation36_spill] sm:$0xff] %v3720_v28  ;;  %v750_v0 = vsub.f32 %v3706_v42, %v3720_v28 }
  0xc6   :  { %2832 = vmatpush3.msra.mxu0 %v3564_v4  ;;  %2872 = vmatprep.subr.mxu1 %v4283_v11 }
  0xc7   :  { %2833 = vmatprep.subr.mxu0 %v4283_v11  ;;  %2873 = vmatpush3.msra.mxu1 %v3682_v39  ;;  %4322 = vst [vmem:[#allocation35_spill] sm:$0xff] %v3717_v48  ;;  %v3723_v30 = vsub.f32 %v60_v12, %v3708_v5  ;;  %v743_v39 = vsub.f32 %v3694_v15, %v3713_v1 }
  0xc8   :  { %2834 = vmatpush3.msra.mxu0 %v3582_v17  ;;  %2874 = vmatprep.subr.mxu1 %v4283_v11 }
  0xc9   :  { %2835 = vmatprep.subr.mxu0 %v4283_v11  ;;  %2875 = vmatpush3.msra.mxu1 %v3701_v16  ;;  %v3734_v19 = vand.u32 4294901760, %v3723_v30  ;;  %v3738_v12 = vand.u32 4294901760, %v743_v39  ;;  %v3741_v16 = vand.u32 4294901760, %v750_v0 }
  0xca   :  { %2836 = vmatpush3.msra.mxu0 %v3596_v24  ;;  %2876 = vmatprep.subr.mxu1 %v4283_v11 }
  0xcb   :  { %2837 = vmatprep.subr.mxu0 %v4283_v11  ;;  %4324 = vst [vmem:[#allocation37_spill] sm:$0xff] %v3734_v19  ;;  %2877 = vmatpush3.msra.mxu1 %v3717_v48  ;;  %4325 = vst [vmem:[#allocation38_spill] sm:$0xff] %v3738_v12  ;;  %v757_v9 = vsub.f32 %v3723_v30, %v3734_v19 }
  0xcc   :  { %2838 = vmatpush3.msra.mxu0 %v3614_v34  ;;  %2878 = vmatprep.subr.mxu1 %v4283_v11  ;;  %4326 = vst [vmem:[#allocation39_spill] sm:$0xff] %v3741_v16 }
  0xcd   :  { %2839 = vmatprep.subr.mxu0 %v4283_v11  ;;  %2879 = vmatpush3.msra.mxu1 %v3738_v12  ;;  %v3747_v54 = vand.u32 4294901760, %v757_v9  ;;  %v3756_v12 = vld [vmem:[%s4251_s2] ss:$0 sm:$0xff] }
  0xce   :  { %2840 = vmatpush3.msra.mxu0 %v3634_v46  ;;  %2880 = vmatprep.subr.mxu1 %v4283_v11 }
  0xcf   :  { %2841 = vmatprep.subr.mxu0 %v4283_v11  ;;  %4327 = vst [vmem:[#allocation40_spill] sm:$0xff] %v3747_v54  ;;  %2881 = vmatpush3.msra.mxu1 %v3741_v16 }
  0xd0   :  { %2842 = vmatpush3.msra.mxu0 %v3653_v60  ;;  %2882 = vmatprep.subr.mxu1 %v4283_v11 }
  0xd1   :  { %2843 = vmatprep.subr.mxu0 %v4283_v11  ;;  %2883 = vmatpush3.msra.mxu1 %v3747_v54 }
  0xd2   :  { %2844 = vmatpush3.msra.mxu0 %v3675_v27  ;;  %2922 = vmatprep.subr.mxu1 %v4283_v11 }
  0xd3   :  { %2845 = vmatprep.subr.mxu0 %v4283_v11 }
  0xd4   :  { %2846 = vmatpush3.msra.mxu0 %v3689_v52 }
  0xd5   :  { %2847 = vmatprep.subr.mxu0 %v4283_v11 }
  0xd6   :  { %2848 = vmatpush3.msra.mxu0 %v3708_v5 }
  0xd7   :  { %2887 = vmatprep.subr.mxu0 %v4283_v11 }
 0x167   :  { %v252_v39 = vpop.f32.mrf.mxu1 }
 0x169   :  { %v2796_v0 = vpop.f32.mrf.mxu1 }
 0x16b   :  { %v400_v48 = vpop.f32.mrf.mxu1 }
 0x16d   :  { %v2806_v53 = vpop.f32.mrf.mxu1 }
 0x16f   :  { %v176_v51 = vpop.f32.mrf.mxu0  ;;  %v546_v9 = vpop.f32.mrf.mxu1 }
 0x170   :  { %v177_v8 = vadd.f32 %v3756_v12, %v176_v51 }
 0x171   :  { %v2791_v16 = vpop.f32.mrf.mxu0  ;;  %v2816_v49 = vpop.f32.mrf.mxu1 }
 0x172   :  { %v253_v7 = vadd.f32 %v252_v39, %v177_v8  ;;  %v4328_v16 = vmov 0.0  }
 0x173   :  { %v326_v6 = vpop.f32.mrf.mxu0 }
 0x174   :  { %v327_v54 = vadd.f32 %v326_v6, %v253_v7 }
 0x175   :  { %v2801_v19 = vpop.f32.mrf.mxu0 }
 0x176   :  { %v401_v11 = vadd.f32 %v400_v48, %v327_v54  ;;  %v4331_v48 = vld [vmem:[#allocation14_spill] sm:$0xff] }
 0x177   :  { %v474_v28 = vpop.f32.mrf.mxu0 }
 0x178   :  { %v475_v0 = vadd.f32 %v474_v28, %v401_v11 }
 0x179   :  { %v2811_v1 = vpop.f32.mrf.mxu0 }
 0x17a   :  { %v547_v53 = vadd.f32 %v546_v9, %v475_v0  ;;  %v4330_v1 = vld [vmem:[#allocation32_spill] sm:$0xff]  ;;  %v4332_v9 = vld [vmem:[#allocation34_spill] sm:$0xff] }
 0x17b   :  { %v4333_v0 = vld [vmem:[#allocation36_spill] sm:$0xff] }
 0x17c   :  { %v550_v10 = vmax.f32 %v547_v53, 0.0 }
 0x17e   :  { %v3759_v50 = vand.u32 4294901760, %v550_v10 }
 0x180   :  { %v3762_v18 = vsub.f32 %v550_v10, %v3759_v50  ;;  %2885 = vmatmul.mubr.f32.vlgmr.msra.gmra.mxu1 %v3759_v50  ;;  %v54_v10 = vpop.xlane.xlu1 %53 }
 0x181   :  { %2923 = vmatpush3.msra.mxu1 %v3431_v22  ;;  %2954 = vmatprep.mubr.msk.f32.mxu1 %vm3328_vm2, %v4328_v16  ;;  %v1203_v49 = vrot.slane %v54_v10, %v3429_v20  ;;  %v4337_v10 = vld [vmem:[#allocation17_spill] sm:$0xff] }
 0x182   :  { %v640_v6 = vand.u32 4294901760, %v3762_v18  ;;  %2924 = vmatprep.subr.mxu1 %v4328_v16 }
 0x183   :  { %2925 = vmatpush3.msra.mxu1 %v3433_v25 }
 0x184   :  { %2926 = vmatprep.subr.mxu1 %v4328_v16  ;;  %v641_v7 = vsub.f32 %v3762_v18, %v640_v6  ;;  %v57_v11 = vpop.xlane.xlu1 %56 }
 0x185   :  { %2927 = vmatpush3.msra.mxu1 %v3446_v31  ;;  %v1207_v51 = vrot.slane %v57_v11, %v3429_v20  ;;  %v4338_v11 = vld [vmem:[#allocation13_spill] sm:$0xff] }
 0x186   :  { %2928 = vmatprep.subr.mxu1 %v4328_v16  ;;  %v642_v8 = vand.u32 4294901760, %v641_v7  ;;  %v4335_v7 = vld [vmem:[#allocation11_spill] sm:$0xff] }
 0x187   :  { %2929 = vmatpush3.msra.mxu1 %v3453_v35  ;;  %v1208_v54 = vsel %vm95_vm3, %v1207_v51, %v1203_v49  ;;  %v4339_v49 = vld [vmem:[#allocation18_spill] sm:$0xff]  ;;  %v4340_v51 = vld [vmem:[#allocation19_spill] sm:$0xff] }
 0x188   :  { %2930 = vmatprep.subr.mxu1 %v4328_v16  ;;  %2850 = vmatmul.mubr.f32.vlgmr.msra.gmra.mxu0 %v642_v8  ;;  %v1209_v20 = vsel %vm97_vm4, %v1208_v54, 0  ;;  %v4341_v54 = vld [vmem:[#allocation20_spill] sm:$0xff] }
 0x189   :  { %2888 = vmatpush3.msra.mxu0 %v3441_v29  ;;  %2931 = vmatpush3.msra.mxu1 %v3528_v56  ;;  %v1277_v19 = vand.u32 4294901760, %v1209_v20 }
 0x18a   :  { %2889 = vmatprep.subr.mxu0 %v4328_v16  ;;  %2932 = vmatprep.subr.mxu1 %v4328_v16 }
 0x18b   :  { %2890 = vmatpush3.msra.mxu0 %v3450_v33  ;;  %2933 = vmatpush3.msra.mxu1 %v3536_v59  ;;  %v1278_v28 = vsub.f32 %v1209_v20, %v1277_v19  ;;  %v4342_v20 = vld [vmem:[#allocation21_spill] sm:$0xff] }
 0x18c   :  { %2891 = vmatprep.subr.mxu0 %v4328_v16  ;;  %2934 = vmatprep.subr.mxu1 %v4328_v16 }
 0x18d   :  { %2892 = vmatpush3.msra.mxu0 %v3459_v38  ;;  %2935 = vmatpush3.msra.mxu1 %v3549_v63  ;;  %v1279_v39 = vand.u32 4294901760, %v1278_v28 }
 0x18e   :  { %2893 = vmatprep.subr.mxu0 %v4328_v16  ;;  %2936 = vmatprep.subr.mxu1 %v4328_v16 }
 0x18f   :  { %2894 = vmatpush3.msra.mxu0 %v3468_v41  ;;  %2937 = vmatpush3.msra.mxu1 %v3564_v4  ;;  %v1280_v53 = vsub.f32 %v1278_v28, %v1279_v39 }
 0x190   :  { %2895 = vmatprep.subr.mxu0 %v4328_v16  ;;  %2938 = vmatprep.subr.mxu1 %v4328_v16 }
 0x191   :  { %2896 = vmatpush3.msra.mxu0 %v3534_v58  ;;  %2939 = vmatpush3.msra.mxu1 %v3582_v17  ;;  %v1281_v8 = vand.u32 4294901760, %v1280_v53  ;;  %v4347_v53 = vld [vmem:[#allocation29_spill] sm:$0xff] }
 0x192   :  { %2897 = vmatprep.subr.mxu0 %v4328_v16  ;;  %2940 = vmatprep.subr.mxu1 %v4328_v16 }
 0x193   :  { %2898 = vmatpush3.msra.mxu0 %v3547_v62  ;;  %2941 = vmatpush3.msra.mxu1 %v3596_v24 }
 0x194   :  { %2899 = vmatprep.subr.mxu0 %v4328_v16  ;;  %2942 = vmatprep.subr.mxu1 %v4328_v16 }
 0x195   :  { %2900 = vmatpush3.msra.mxu0 %v3562_v3  ;;  %2943 = vmatpush3.msra.mxu1 %v3614_v34 }
 0x196   :  { %2901 = vmatprep.subr.mxu0 %v4328_v16  ;;  %2944 = vmatprep.subr.mxu1 %v4328_v16 }
 0x197   :  { %2902 = vmatpush3.msra.mxu0 %v3579_v14  ;;  %2945 = vmatpush3.msra.mxu1 %v3634_v46 }
 0x198   :  { %2903 = vmatprep.subr.mxu0 %v4328_v16  ;;  %2946 = vmatprep.subr.mxu1 %v4328_v16 }
 0x199   :  { %2904 = vmatpush3.msra.mxu0 %v3600_v26  ;;  %2947 = vmatpush3.msra.mxu1 %v3653_v60 }
 0x19a   :  { %2905 = vmatprep.subr.mxu0 %v4328_v16  ;;  %2948 = vmatprep.subr.mxu1 %v4328_v16 }
 0x19b   :  { %2906 = vmatpush3.msra.mxu0 %v3612_v32  ;;  %2949 = vmatpush3.msra.mxu1 %v3675_v27 }
 0x19c   :  { %2907 = vmatprep.subr.mxu0 %v4328_v16  ;;  %2950 = vmatprep.subr.mxu1 %v4328_v16 }
 0x19d   :  { %2908 = vmatpush3.msra.mxu0 %v3632_v45  ;;  %2951 = vmatpush3.msra.mxu1 %v3689_v52 }
 0x19e   :  { %2909 = vmatprep.subr.mxu0 %v4328_v16  ;;  %2952 = vmatprep.subr.mxu1 %v4328_v16 }
 0x19f   :  { %2910 = vmatpush3.msra.mxu0 %v3651_v57  ;;  %2953 = vmatpush3.msra.mxu1 %v3708_v5 }
 0x1a0   :  { %2911 = vmatprep.subr.mxu0 %v4328_v16  ;;  %2955 = vmatmul.mubr.f32.vlgmr.msra.gmra.mxu1 %v640_v6  ;;  %v4334_v6 = vld [vmem:[#allocation37_spill] sm:$0xff] }
 0x1a1   :  { %2992 = vmatprep.subr.mxu1 %v4328_v16  ;;  %2912 = vmatpush3.msra.mxu0 %v3671_v21 }
 0x1a2   :  { %2993 = vmatpush3.msra.mxu1 %v3431_v22  ;;  %2913 = vmatprep.subr.mxu0 %v4328_v16 }
 0x1a3   :  { %2994 = vmatprep.subr.mxu1 %v4328_v16  ;;  %2914 = vmatpush3.msra.mxu0 %v3694_v15 }
 0x1a4   :  { %2995 = vmatpush3.msra.mxu1 %v3433_v25  ;;  %2915 = vmatprep.subr.mxu0 %v4328_v16 }
 0x1a5   :  { %2996 = vmatprep.subr.mxu1 %v4328_v16  ;;  %2916 = vmatpush3.msra.mxu0 %v3706_v42 }
 0x1a6   :  { %2997 = vmatpush3.msra.mxu1 %v3446_v31  ;;  %2917 = vmatprep.subr.mxu0 %v4328_v16 }
 0x1a7   :  { %2998 = vmatprep.subr.mxu1 %v4328_v16  ;;  %2918 = vmatpush3.msra.mxu0 %v3723_v30 }
 0x1a8   :  { %2919 = vmatprep.mubr.msk.f32.mxu0 %vm3328_vm2, %v4328_v16  ;;  %2999 = vmatpush3.msra.mxu1 %v3453_v35 }
 0x1a9   :  { %2920 = vmatmul.mubr.f32.vlgmr.msra.gmra.mxu0 %v3762_v18  ;;  %2957 = vmatprep.subr.mxu0 %v4328_v16  ;;  %v4329_v18 = vld [vmem:[#allocation30_spill] sm:$0xff] }
 0x1aa   :  { %3000 = vmatprep.subr.mxu1 %v4328_v16  ;;  %2958 = vmatpush3.msra.mxu0 %v3456_v37 }
 0x1ab   :  { %3001 = vmatpush3.msra.mxu1 %v3528_v56  ;;  %2959 = vmatprep.subr.mxu0 %v4328_v16 }
 0x1ac   :  { %3002 = vmatprep.subr.mxu1 %v4328_v16  ;;  %2960 = vmatpush3.msra.mxu0 %v3462_v40 }
 0x1ad   :  { %3003 = vmatpush3.msra.mxu1 %v3536_v59  ;;  %2961 = vmatprep.subr.mxu0 %v4328_v16 }
 0x1ae   :  { %3004 = vmatprep.subr.mxu1 %v4328_v16  ;;  %2962 = vmatpush3.msra.mxu0 %v3474_v44 }
 0x1af   :  { %3005 = vmatpush3.msra.mxu1 %v3549_v63  ;;  %2963 = vmatprep.subr.mxu0 %v4328_v16 }
 0x1b0   :  { %3006 = vmatprep.subr.mxu1 %v4328_v16  ;;  %2964 = vmatpush3.msra.mxu0 %v3482_v47 }
 0x1b1   :  { %3007 = vmatpush3.msra.mxu1 %v3564_v4  ;;  %2965 = vmatprep.subr.mxu0 %v4328_v16 }
 0x1b2   :  { %3008 = vmatprep.subr.mxu1 %v4328_v16  ;;  %2966 = vmatpush3.msra.mxu0 %v3544_v61 }
 0x1b3   :  { %3009 = vmatpush3.msra.mxu1 %v3582_v17  ;;  %2967 = vmatprep.subr.mxu0 %v4328_v16 }
 0x1b4   :  { %3010 = vmatprep.subr.mxu1 %v4328_v16  ;;  %2968 = vmatpush3.msra.mxu0 %v3559_v2 }
 0x1b5   :  { %3011 = vmatpush3.msra.mxu1 %v3596_v24  ;;  %2969 = vmatprep.subr.mxu0 %v4328_v16 }
 0x1b6   :  { %3012 = vmatprep.subr.mxu1 %v4328_v16  ;;  %2970 = vmatpush3.msra.mxu0 %v3576_v13 }
 0x1b7   :  { %3013 = vmatpush3.msra.mxu1 %v3614_v34  ;;  %2971 = vmatprep.subr.mxu0 %v4328_v16 }
 0x1b8   :  { %3014 = vmatprep.subr.mxu1 %v4328_v16  ;;  %2972 = vmatpush3.msra.mxu0 %v3594_v23 }
 0x1b9   :  { %3015 = vmatpush3.msra.mxu1 %v3634_v46  ;;  %2973 = vmatprep.subr.mxu0 %v4328_v16 }
 0x1ba   :  { %3016 = vmatprep.subr.mxu1 %v4328_v16  ;;  %2974 = vmatpush3.msra.mxu0 %v3619_v36 }
 0x1bb   :  { %3017 = vmatpush3.msra.mxu1 %v3653_v60  ;;  %2975 = vmatprep.subr.mxu0 %v4328_v16 }
 0x1bc   :  { %3018 = vmatprep.subr.mxu1 %v4328_v16  ;;  %2976 = vmatpush3.msra.mxu0 %v3629_v43 }
 0x1bd   :  { %3019 = vmatpush3.msra.mxu1 %v3675_v27  ;;  %2977 = vmatprep.subr.mxu0 %v4328_v16 }
 0x1be   :  { %3020 = vmatprep.subr.mxu1 %v4328_v16  ;;  %2978 = vmatpush3.msra.mxu0 %v3648_v55 }
 0x1bf   :  { %3021 = vmatpush3.msra.mxu1 %v3689_v52  ;;  %2979 = vmatprep.subr.mxu0 %v4328_v16 }
 0x1c0   :  { %3022 = vmatprep.subr.mxu1 %v4328_v16  ;;  %2980 = vmatpush3.msra.mxu0 %v4329_v18 }
 0x1c1   :  { %3023 = vmatpush3.msra.mxu1 %v3708_v5  ;;  %3024 = vmatprep.mubr.msk.f32.mxu1 %vm3328_vm2, %v4328_v16 }
 0x1c2   :  { %2981 = vmatprep.subr.mxu0 %v4328_v16  ;;  %3025 = vmatmul.mubr.f32.vlgmr.msra.gmra.mxu1 %v3759_v50 }
 0x1c3   :  { %2982 = vmatpush3.msra.mxu0 %v4330_v1  ;;  %3032 = vmatprep.subr.mxu1 %v4328_v16 }
 0x1c4   :  { %2983 = vmatprep.subr.mxu0 %v4328_v16  ;;  %3033 = vmatpush3.msra.mxu1 %v4331_v48  ;;  %v4345_v48 = vld [vmem:[#allocation25_spill] sm:$0xff] }
 0x1c5   :  { %2984 = vmatpush3.msra.mxu0 %v4332_v9  ;;  %3034 = vmatprep.mubr.msk.f32.mxu1 %vm3328_vm2, %v4328_v16 }
 0x1c6   :  { %2985 = vmatprep.subr.mxu0 %v4328_v16  ;;  %3035 = vmatmul.mubr.f32.vlgmr.msra.gmra.mxu1 %v1277_v19 }
 0x1c7   :  { %2986 = vmatpush3.msra.mxu0 %v4333_v0  ;;  %3042 = vmatprep.subr.mxu1 %v4328_v16 }
 0x1c8   :  { %2987 = vmatprep.subr.mxu0 %v4328_v16  ;;  %2989 = vmatprep.mubr.msk.f32.mxu0 %vm3328_vm2, %v4328_v16 }
 0x1c9   :  { %2988 = vmatpush3.msra.mxu0 %v4334_v6  ;;  %3043 = vmatpush3.msra.mxu1 %v4335_v7 }
 0x1ca   :  { %3044 = vmatprep.mubr.msk.f32.mxu1 %vm3328_vm2, %v4328_v16  ;;  %2990 = vmatmul.mubr.f32.vlgmr.msra.gmra.mxu0 %v3759_v50  ;;  %v4336_v50 = vld [vmem:[#allocation12_spill] sm:$0xff] }
 0x1cb   :  { %3027 = vmatprep.subr.mxu0 %v4328_v16  ;;  %3045 = vmatmul.mubr.f32.vlgmr.msra.gmra.mxu1 %v1279_v39  ;;  %v4346_v39 = vld [vmem:[#allocation28_spill] sm:$0xff] }
 0x1cc   :  { %3028 = vmatpush3.msra.mxu0 %v4335_v7  ;;  %3052 = vmatprep.subr.mxu1 %v4328_v16 }
 0x1cd   :  { %3029 = vmatprep.mubr.msk.f32.mxu0 %vm3328_vm2, %v4328_v16  ;;  %3053 = vmatpush3.msra.mxu1 %v4335_v7  ;;  %v4348_v7 = vld [vmem:[#allocation31_spill] sm:$0xff] }
 0x1ce   :  { %3054 = vmatprep.mubr.msk.f32.mxu1 %vm3328_vm2, %v4328_v16  ;;  %3030 = vmatmul.mubr.f32.vlgmr.msra.gmra.mxu0 %v1281_v8  ;;  %v4349_v8 = vld [vmem:[#allocation33_spill] sm:$0xff] }
 0x1cf   :  { %3037 = vmatprep.subr.mxu0 %v4328_v16  ;;  %3055 = vmatmul.mubr.f32.vlgmr.msra.gmra.mxu1 %v1277_v19 }
 0x1d0   :  { %3038 = vmatpush3.msra.mxu0 %v4336_v50  ;;  %3039 = vmatprep.mubr.msk.f32.mxu0 %vm3328_vm2, %v4328_v16  ;;  %v4350_v50 = vld [vmem:[#allocation35_spill] sm:$0xff] }
 0x1d1   :  { %3047 = vmatprep.subr.mxu0 %v4328_v16  ;;  %3092 = vmatprep.subr.mxu1 %v4328_v16 }
 0x1d2   :  { %3040 = vmatmul.mubr.f32.vlgmr.msra.gmra.mxu0 %v1278_v28  ;;  %3093 = vmatpush3.msra.mxu1 %v4337_v10  ;;  %v4344_v28 = vld [vmem:[#allocation23_spill] sm:$0xff]  ;;  %v4351_v10 = vld [vmem:[#allocation38_spill] sm:$0xff] }
 0x1d3   :  { %3048 = vmatpush3.msra.mxu0 %v4338_v11  ;;  %3049 = vmatprep.mubr.msk.f32.mxu0 %vm3328_vm2, %v4328_v16  ;;  %v4352_v11 = vld [vmem:[#allocation39_spill] sm:$0xff] }
 0x1d4   :  { %3094 = vmatprep.subr.mxu1 %v4328_v16  ;;  %3057 = vmatprep.subr.mxu0 %v4328_v16 }
 0x1d5   :  { %3095 = vmatpush3.msra.mxu1 %v4339_v49  ;;  %3124 = vmatprep.mubr.msk.f32.mxu1 %vm3328_vm2, %v4328_v16  ;;  %v4353_v49 = vld [vmem:[#allocation40_spill] sm:$0xff] }
 0x1d6   :  { %3050 = vmatmul.mubr.f32.vlgmr.msra.gmra.mxu0 %v1277_v19  ;;  %3096 = vmatprep.subr.mxu1 %v4328_v16  ;;  %v4343_v19 = vld [vmem:[#allocation22_spill] sm:$0xff] }
 0x1d7   :  { %3097 = vmatpush3.msra.mxu1 %v4340_v51  ;;  %3058 = vmatpush3.msra.mxu0 %v3431_v22 }
 0x1d8   :  { %3098 = vmatprep.subr.mxu1 %v4328_v16  ;;  %3059 = vmatprep.subr.mxu0 %v4328_v16 }
 0x1d9   :  { %3099 = vmatpush3.msra.mxu1 %v4341_v54  ;;  %3060 = vmatpush3.msra.mxu0 %v3433_v25 }
 0x1da   :  { %3100 = vmatprep.subr.mxu1 %v4328_v16  ;;  %3061 = vmatprep.subr.mxu0 %v4328_v16 }
 0x1db   :  { %3101 = vmatpush3.msra.mxu1 %v4342_v20  ;;  %3062 = vmatpush3.msra.mxu0 %v3446_v31  ;;  %v4005_v20 = vld [vmem:[%s4253_s4] ss:$0 sm:$0xff] }
 0x1dc   :  { %3102 = vmatprep.subr.mxu1 %v4328_v16  ;;  %3063 = vmatprep.subr.mxu0 %v4328_v16  ;;  %4354 = vst [vmem:[#allocation14_spill] sm:$0xff] %v4005_v20 }
 0x1dd   :  { %3103 = vmatpush3.msra.mxu1 %v4343_v19  ;;  %3064 = vmatpush3.msra.mxu0 %v3453_v35 }
 0x1de   :  { %3104 = vmatprep.subr.mxu1 %v4328_v16  ;;  %3065 = vmatprep.subr.mxu0 %v4328_v16 }
 0x1df   :  { %3105 = vmatpush3.msra.mxu1 %v4344_v28  ;;  %3066 = vmatpush3.msra.mxu0 %v3528_v56 }
 0x1e0   :  { %3106 = vmatprep.subr.mxu1 %v4328_v16  ;;  %3067 = vmatprep.subr.mxu0 %v4328_v16 }
 0x1e1   :  { %3107 = vmatpush3.msra.mxu1 %v4345_v48  ;;  %3068 = vmatpush3.msra.mxu0 %v3536_v59 }
 0x1e2   :  { %3108 = vmatprep.subr.mxu1 %v4328_v16  ;;  %3069 = vmatprep.subr.mxu0 %v4328_v16 }
 0x1e3   :  { %3109 = vmatpush3.msra.mxu1 %v4346_v39  ;;  %3070 = vmatpush3.msra.mxu0 %v3549_v63 }
 0x1e4   :  { %3110 = vmatprep.subr.mxu1 %v4328_v16  ;;  %3071 = vmatprep.subr.mxu0 %v4328_v16 }
 0x1e5   :  { %3111 = vmatpush3.msra.mxu1 %v4347_v53  ;;  %3072 = vmatpush3.msra.mxu0 %v3564_v4 }
 0x1e6   :  { %3112 = vmatprep.subr.mxu1 %v4328_v16  ;;  %3073 = vmatprep.subr.mxu0 %v4328_v16 }
 0x1e7   :  { %3113 = vmatpush3.msra.mxu1 %v4348_v7  ;;  %3074 = vmatpush3.msra.mxu0 %v3582_v17 }
 0x1e8   :  { %3114 = vmatprep.subr.mxu1 %v4328_v16  ;;  %3075 = vmatprep.subr.mxu0 %v4328_v16 }
 0x1e9   :  { %3115 = vmatpush3.msra.mxu1 %v4349_v8  ;;  %3076 = vmatpush3.msra.mxu0 %v3596_v24 }
 0x1ea   :  { %3116 = vmatprep.subr.mxu1 %v4328_v16  ;;  %3077 = vmatprep.subr.mxu0 %v4328_v16 }
 0x1eb   :  { %3117 = vmatpush3.msra.mxu1 %v4350_v50  ;;  %3078 = vmatpush3.msra.mxu0 %v3614_v34 }
 0x1ec   :  { %3118 = vmatprep.subr.mxu1 %v4328_v16  ;;  %3079 = vmatprep.subr.mxu0 %v4328_v16 }
 0x1ed   :  { %3119 = vmatpush3.msra.mxu1 %v4351_v10  ;;  %3080 = vmatpush3.msra.mxu0 %v3634_v46 }
 0x1ee   :  { %3120 = vmatprep.subr.mxu1 %v4328_v16  ;;  %3081 = vmatprep.subr.mxu0 %v4328_v16 }
 0x1ef   :  { %3121 = vmatpush3.msra.mxu1 %v4352_v11  ;;  %3082 = vmatpush3.msra.mxu0 %v3653_v60 }
 0x1f0   :  { %3122 = vmatprep.subr.mxu1 %v4328_v16  ;;  %3083 = vmatprep.subr.mxu0 %v4328_v16 }
 0x1f1   :  { %3123 = vmatpush3.msra.mxu1 %v4353_v49  ;;  %3084 = vmatpush3.msra.mxu0 %v3675_v27 }
 0x1f2   :  { %3162 = vmatprep.subr.mxu1 %v4328_v16  ;;  %3085 = vmatprep.subr.mxu0 %v4328_v16 }
 0x1f3   :  { %3086 = vmatpush3.msra.mxu0 %v3689_v52  ;;  %3089 = vmatprep.mubr.msk.f32.mxu0 %vm3328_vm2, %v4328_v16 }
 0x1f4   :  { %3087 = vmatprep.subr.mxu0 %v4328_v16 }
 0x1f5   :  { %3088 = vmatpush3.msra.mxu0 %v3708_v5 }
 0x1f6   :  { %3127 = vmatprep.subr.mxu0 %v4328_v16 }
 0x240   :  { %v795_v51 = vpop.f32.mrf.mxu1 }
 0x242   :  { %v2886_v54 = vpop.f32.mrf.mxu1 }
 0x248   :  { %v644_v19 = vpop.f32.mrf.mxu0 }
 0x249   :  { %v645_v28 = vadd.f32 %v4005_v20, %v644_v19 }
 0x24a   :  { %v2851_v48 = vpop.f32.mrf.mxu0 }
 0x24b   :  { %v796_v39 = vadd.f32 %v795_v51, %v645_v28 }
 0x260   :  { %v988_v53 = vpop.f32.mrf.mxu1 }
 0x262   :  { %v2956_v7 = vpop.f32.mrf.mxu1 }
 0x269   :  { %v899_v8 = vpop.f32.mrf.mxu0 }
 0x26a   :  { %v900_v50 = vadd.f32 %v899_v8, %v796_v39 }
 0x26b   :  { %v2921_v10 = vpop.f32.mrf.mxu0 }
 0x26c   :  { %v989_v11 = vadd.f32 %v988_v53, %v900_v50 }
 0x282   :  { %v1194_v49 = vpop.f32.mrf.mxu1 }
 0x284   :  { %v3026_v6 = vpop.f32.mrf.mxu1 }
 0x286   :  { %v1359_v0 = vpop.f32.mrf.mxu1 }
 0x288   :  { %v3036_v54 = vpop.f32.mrf.mxu1 }
 0x28a   :  { %v1107_v9 = vpop.f32.mrf.mxu0 }
 0x28b   :  { %v1108_v1 = vadd.f32 %v1107_v9, %v989_v11  ;;  %v1507_v18 = vpop.f32.mrf.mxu1 }
 0x28c   :  { %v2991_v55 = vpop.f32.mrf.mxu0 }
 0x28d   :  { %v4008_v43 = vadd.f32 %v1194_v49, %v1108_v1  ;;  %v3046_v36 = vpop.f32.mrf.mxu1 }
 0x28e   :  { %v1283_v19 = vpop.f32.mrf.mxu0 }
 0x28f   :  { %v1284_v51 = vadd.f32 %v3756_v12, %v1283_v19  ;;  %v1653_v28 = vpop.f32.mrf.mxu1 }
 0x290   :  { %v3031_v48 = vpop.f32.mrf.mxu0 }
 0x291   :  { %v3056_v7 = vpop.f32.mrf.mxu1  ;;  %v1360_v39 = vadd.f32 %v1359_v0, %v1284_v51 }
 0x292   :  { %v1433_v8 = vpop.f32.mrf.mxu0 }
 0x293   :  { %v1434_v53 = vadd.f32 %v1433_v8, %v1360_v39 }
 0x294   :  { %v3041_v50 = vpop.f32.mrf.mxu0 }
 0x295   :  { %v1508_v6 = vadd.f32 %v1507_v18, %v1434_v53 }
 0x296   :  { %v1581_v10 = vpop.f32.mrf.mxu0 }
 0x297   :  { %v1582_v54 = vadd.f32 %v1581_v10, %v1508_v6 }
 0x298   :  { %v3051_v20 = vpop.f32.mrf.mxu0 }
 0x299   :  { %v1654_v9 = vadd.f32 %v1653_v28, %v1582_v54 }
 0x29b   :  { %v1657_v11 = vmax.f32 %v1654_v9, 0.0 }
 0x29d   :  { %v4011_v55 = vand.u32 4294901760, %v1657_v11 }
 0x29f   :  { %v4014_v36 = vsub.f32 %v1657_v11, %v4011_v55  ;;  %3125 = vmatmul.mubr.f32.vlgmr.msra.gmra.mxu1 %v4011_v55 }
 0x2a0   :  { %3163 = vmatpush3.msra.mxu1 %v3431_v22  ;;  %3194 = vmatprep.mubr.msk.f32.mxu1 %vm3328_vm2, %v4328_v16 }
 0x2a1   :  { %v1741_v12 = vand.u32 4294901760, %v4014_v36  ;;  %3164 = vmatprep.subr.mxu1 %v4328_v16 }
 0x2a2   :  { %3165 = vmatpush3.msra.mxu1 %v3433_v25 }
 0x2a3   :  { %3166 = vmatprep.subr.mxu1 %v4328_v16  ;;  %v1742_v18 = vsub.f32 %v4014_v36, %v1741_v12 }
 0x2a4   :  { %3167 = vmatpush3.msra.mxu1 %v3446_v31 }
 0x2a5   :  { %3168 = vmatprep.subr.mxu1 %v4328_v16  ;;  %v1743_v1 = vand.u32 4294901760, %v1742_v18 }
 0x2a6   :  { %3169 = vmatpush3.msra.mxu1 %v3453_v35 }
 0x2a7   :  { %3170 = vmatprep.subr.mxu1 %v4328_v16  ;;  %3090 = vmatmul.mubr.f32.vlgmr.msra.gmra.mxu0 %v1743_v1 }
 0x2a8   :  { %3128 = vmatpush3.msra.mxu0 %v3441_v29  ;;  %3171 = vmatpush3.msra.mxu1 %v3528_v56  ;;  %v4358_v29 = vld [vmem:[#allocation30_spill] sm:$0xff] }
 0x2a9   :  { %3129 = vmatprep.subr.mxu0 %v4328_v16  ;;  %3172 = vmatprep.subr.mxu1 %v4328_v16 }
 0x2aa   :  { %3130 = vmatpush3.msra.mxu0 %v3450_v33  ;;  %3173 = vmatpush3.msra.mxu1 %v3536_v59  ;;  %v4360_v33 = vld [vmem:[#allocation34_spill] sm:$0xff] }
 0x2ab   :  { %3131 = vmatprep.subr.mxu0 %v4328_v16  ;;  %3174 = vmatprep.subr.mxu1 %v4328_v16 }
 0x2ac   :  { %3132 = vmatpush3.msra.mxu0 %v3459_v38  ;;  %3175 = vmatpush3.msra.mxu1 %v3549_v63 }
 0x2ad   :  { %3133 = vmatprep.subr.mxu0 %v4328_v16  ;;  %3176 = vmatprep.subr.mxu1 %v4328_v16 }
 0x2ae   :  { %3134 = vmatpush3.msra.mxu0 %v3468_v41  ;;  %3177 = vmatpush3.msra.mxu1 %v3564_v4 }
 0x2af   :  { %3135 = vmatprep.subr.mxu0 %v4328_v16  ;;  %3178 = vmatprep.subr.mxu1 %v4328_v16 }
 0x2b0   :  { %3136 = vmatpush3.msra.mxu0 %v3534_v58  ;;  %3179 = vmatpush3.msra.mxu1 %v3582_v17 }
 0x2b1   :  { %3137 = vmatprep.subr.mxu0 %v4328_v16  ;;  %3180 = vmatprep.subr.mxu1 %v4328_v16 }
 0x2b2   :  { %3138 = vmatpush3.msra.mxu0 %v3547_v62  ;;  %3181 = vmatpush3.msra.mxu1 %v3596_v24 }
 0x2b3   :  { %3139 = vmatprep.subr.mxu0 %v4328_v16  ;;  %3182 = vmatprep.subr.mxu1 %v4328_v16 }
 0x2b4   :  { %3140 = vmatpush3.msra.mxu0 %v3562_v3  ;;  %3183 = vmatpush3.msra.mxu1 %v3614_v34 }
 0x2b5   :  { %3141 = vmatprep.subr.mxu0 %v4328_v16  ;;  %3184 = vmatprep.subr.mxu1 %v4328_v16 }
 0x2b6   :  { %3142 = vmatpush3.msra.mxu0 %v3579_v14  ;;  %3185 = vmatpush3.msra.mxu1 %v3634_v46 }
 0x2b7   :  { %3143 = vmatprep.subr.mxu0 %v4328_v16  ;;  %3186 = vmatprep.subr.mxu1 %v4328_v16 }
 0x2b8   :  { %3144 = vmatpush3.msra.mxu0 %v3600_v26  ;;  %3187 = vmatpush3.msra.mxu1 %v3653_v60 }
 0x2b9   :  { %3145 = vmatprep.subr.mxu0 %v4328_v16  ;;  %3188 = vmatprep.subr.mxu1 %v4328_v16 }
 0x2ba   :  { %3146 = vmatpush3.msra.mxu0 %v3612_v32  ;;  %3189 = vmatpush3.msra.mxu1 %v3675_v27 }
 0x2bb   :  { %3147 = vmatprep.subr.mxu0 %v4328_v16  ;;  %3190 = vmatprep.subr.mxu1 %v4328_v16 }
 0x2bc   :  { %3148 = vmatpush3.msra.mxu0 %v3632_v45  ;;  %3191 = vmatpush3.msra.mxu1 %v3689_v52  ;;  %v4364_v45 = vld [vmem:[#allocation16_spill] sm:$0xff] }
 0x2bd   :  { %3149 = vmatprep.subr.mxu0 %v4328_v16  ;;  %3192 = vmatprep.subr.mxu1 %v4328_v16 }
 0x2be   :  { %3150 = vmatpush3.msra.mxu0 %v3651_v57  ;;  %3193 = vmatpush3.msra.mxu1 %v3708_v5  ;;  %v4160_v57 = vsub.s32 0, %v4364_v45 }
 0x2bf   :  { %3151 = vmatprep.subr.mxu0 %v4328_v16  ;;  %3195 = vmatmul.mubr.f32.vlgmr.msra.gmra.mxu1 %v1741_v12 }
 0x2c0   :  { %3232 = vmatprep.subr.mxu1 %v4328_v16  ;;  %3152 = vmatpush3.msra.mxu0 %v3671_v21 }
 0x2c1   :  { %3233 = vmatpush3.msra.mxu1 %v3431_v22  ;;  %3153 = vmatprep.subr.mxu0 %v4328_v16  ;;  %v4356_v22 = vld [vmem:[#allocation26_spill] sm:$0xff] }
 0x2c2   :  { %3234 = vmatprep.subr.mxu1 %v4328_v16  ;;  %3154 = vmatpush3.msra.mxu0 %v3694_v15  ;;  %v4355_v15 = vld [vmem:[#allocation24_spill] sm:$0xff] }
 0x2c3   :  { %3235 = vmatpush3.msra.mxu1 %v3433_v25  ;;  %3155 = vmatprep.subr.mxu0 %v4328_v16  ;;  %v4357_v25 = vld [vmem:[#allocation27_spill] sm:$0xff] }
 0x2c4   :  { %3236 = vmatprep.subr.mxu1 %v4328_v16  ;;  %3156 = vmatpush3.msra.mxu0 %v3706_v42 }
 0x2c5   :  { %3237 = vmatpush3.msra.mxu1 %v3446_v31  ;;  %3157 = vmatprep.subr.mxu0 %v4328_v16  ;;  %v4359_v31 = vld [vmem:[#allocation32_spill] sm:$0xff] }
 0x2c6   :  { %3238 = vmatprep.subr.mxu1 %v4328_v16  ;;  %3158 = vmatpush3.msra.mxu0 %v3723_v30 }
 0x2c7   :  { %3159 = vmatprep.mubr.msk.f32.mxu0 %vm3328_vm2, %v4328_v16  ;;  %3239 = vmatpush3.msra.mxu1 %v3453_v35  ;;  %v4361_v35 = vld [vmem:[#allocation36_spill] sm:$0xff] }
 0x2c8   :  { %3160 = vmatmul.mubr.f32.vlgmr.msra.gmra.mxu0 %v4014_v36  ;;  %3197 = vmatprep.subr.mxu0 %v4328_v16 }
 0x2c9   :  { %3240 = vmatprep.subr.mxu1 %v4328_v16  ;;  %3198 = vmatpush3.msra.mxu0 %v3456_v37  ;;  %v4362_v37 = vld [vmem:[#allocation37_spill] sm:$0xff] }
 0x2ca   :  { %3241 = vmatpush3.msra.mxu1 %v3528_v56  ;;  %3199 = vmatprep.subr.mxu0 %v4328_v16 }
 0x2cb   :  { %3242 = vmatprep.subr.mxu1 %v4328_v16  ;;  %3200 = vmatpush3.msra.mxu0 %v3462_v40 }
 0x2cc   :  { %3243 = vmatpush3.msra.mxu1 %v3536_v59  ;;  %3201 = vmatprep.subr.mxu0 %v4328_v16 }
 0x2cd   :  { %3244 = vmatprep.subr.mxu1 %v4328_v16  ;;  %3202 = vmatpush3.msra.mxu0 %v3474_v44 }
 0x2ce   :  { %3245 = vmatpush3.msra.mxu1 %v3549_v63  ;;  %3203 = vmatprep.subr.mxu0 %v4328_v16 }
 0x2cf   :  { %3246 = vmatprep.subr.mxu1 %v4328_v16  ;;  %3204 = vmatpush3.msra.mxu0 %v3482_v47 }
 0x2d0   :  { %3247 = vmatpush3.msra.mxu1 %v3564_v4  ;;  %3205 = vmatprep.subr.mxu0 %v4328_v16 }
 0x2d1   :  { %3248 = vmatprep.subr.mxu1 %v4328_v16  ;;  %3206 = vmatpush3.msra.mxu0 %v3544_v61  ;;  %v4363_v61 = vld [vmem:[#allocation14_spill] sm:$0xff] }
 0x2d2   :  { %3249 = vmatpush3.msra.mxu1 %v3582_v17  ;;  %3207 = vmatprep.subr.mxu0 %v4328_v16 }
 0x2d3   :  { %3250 = vmatprep.subr.mxu1 %v4328_v16  ;;  %3208 = vmatpush3.msra.mxu0 %v3559_v2 }
 0x2d4   :  { %3251 = vmatpush3.msra.mxu1 %v3596_v24  ;;  %3209 = vmatprep.subr.mxu0 %v4328_v16 }
 0x2d5   :  { %3252 = vmatprep.subr.mxu1 %v4328_v16  ;;  %3210 = vmatpush3.msra.mxu0 %v3576_v13 }
 0x2d6   :  { %3253 = vmatpush3.msra.mxu1 %v3614_v34  ;;  %3211 = vmatprep.subr.mxu0 %v4328_v16 }
 0x2d7   :  { %3254 = vmatprep.subr.mxu1 %v4328_v16  ;;  %3212 = vmatpush3.msra.mxu0 %v3594_v23 }
 0x2d8   :  { %3255 = vmatpush3.msra.mxu1 %v3634_v46  ;;  %3213 = vmatprep.subr.mxu0 %v4328_v16  ;;  %v2315_v46 = vsub.s32 1, %v4364_v45 }
 0x2d9   :  { %3256 = vmatprep.subr.mxu1 %v4328_v16  ;;  %3214 = vmatpush3.msra.mxu0 %v4355_v15 }
 0x2da   :  { %3257 = vmatpush3.msra.mxu1 %v3653_v60  ;;  %3215 = vmatprep.subr.mxu0 %v4328_v16 }
 0x2db   :  { %3258 = vmatprep.subr.mxu1 %v4328_v16  ;;  %3216 = vmatpush3.msra.mxu0 %v4356_v22 }
 0x2dc   :  { %3259 = vmatpush3.msra.mxu1 %v3675_v27  ;;  %3217 = vmatprep.subr.mxu0 %v4328_v16 }
 0x2dd   :  { %3260 = vmatprep.subr.mxu1 %v4328_v16  ;;  %3218 = vmatpush3.msra.mxu0 %v4357_v25 }
 0x2de   :  { %3261 = vmatpush3.msra.mxu1 %v3689_v52  ;;  %3219 = vmatprep.subr.mxu0 %v4328_v16 }
 0x2df   :  { %3262 = vmatprep.subr.mxu1 %v4328_v16  ;;  %3220 = vmatpush3.msra.mxu0 %v4358_v29 }
 0x2e0   :  { %3263 = vmatpush3.msra.mxu1 %v3708_v5  ;;  %3264 = vmatprep.mubr.msk.f32.mxu1 %vm3328_vm2, %v4328_v16 }
 0x2e1   :  { %3221 = vmatprep.subr.mxu0 %v4328_v16  ;;  %3265 = vmatmul.mubr.f32.vlgmr.msra.gmra.mxu1 %v4011_v55 }
 0x2e2   :  { %3222 = vmatpush3.msra.mxu0 %v4359_v31  ;;  %3229 = vmatprep.mubr.msk.f32.mxu0 %vm3328_vm2, %v4328_v16 }
 0x2e3   :  { %3223 = vmatprep.subr.mxu0 %v4328_v16 }
 0x2e4   :  { %3224 = vmatpush3.msra.mxu0 %v4360_v33 }
 0x2e5   :  { %3225 = vmatprep.subr.mxu0 %v4328_v16 }
 0x2e6   :  { %3226 = vmatpush3.msra.mxu0 %v4361_v35 }
 0x2e7   :  { %3227 = vmatprep.subr.mxu0 %v4328_v16  ;;  %v3289_v16 = vld [vmem:[%s4249_s0] sm:$0xf] }
 0x2e8   :  { %3228 = vmatpush3.msra.mxu0 %v4362_v37 }
 0x2e9   :  { %3230 = vmatmul.mubr.f32.vlgmr.msra.gmra.mxu0 %v4011_v55 }
 0x35f   :  { %v1896_v38 = vpop.f32.mrf.mxu1 }
 0x361   :  { %v3126_v40 = vpop.f32.mrf.mxu1 }
 0x367   :  { %v1745_v41 = vpop.f32.mrf.mxu0 }
 0x368   :  { %v1746_v62 = vadd.f32 %v4363_v61, %v1745_v41 }
 0x369   :  { %v3091_v44 = vpop.f32.mrf.mxu0 }
 0x36a   :  { %v1897_v2 = vadd.f32 %v1896_v38, %v1746_v62 }
 0x37f   :  { %v2089_v47 = vpop.f32.mrf.mxu1 }
 0x381   :  { %v3196_v56 = vpop.f32.mrf.mxu1 }
 0x388   :  { %v2000_v58 = vpop.f32.mrf.mxu0 }
 0x389   :  { %v2001_v4 = vadd.f32 %v2000_v58, %v1897_v2 }
 0x38a   :  { %v3161_v59 = vpop.f32.mrf.mxu0 }
 0x38b   :  { %v2090_v13 = vadd.f32 %v2089_v47, %v2001_v4  ;;  %v2420_v47 = vstv %s2550_s22 }
 0x3a1   :  { %v2295_v63 = vpop.f32.mrf.mxu1 }
 0x3a3   :  { %v3266_v3 = vpop.f32.mrf.mxu1 }
 0x3a9   :  { %v2208_v14 = vpop.f32.mrf.mxu0 }
 0x3aa   :  { %v2209_v17 = vadd.f32 %v2208_v14, %v2090_v13  ;;  %v4365_v13 = vld [vmem:[#allocation15_spill] sm:$0xff] }
 0x3ab   :  { %v3231_v23 = vpop.f32.mrf.mxu0  ;;  %v2379_v14 = vadd.s32 4294967293, %v4365_v13  ;;  %vm2427_vm15 = vcmp.lt.s32.totalorder %v4365_v13, 16 }
 0x3ac   :  { %v2296_v24 = vadd.f32 %v2295_v63, %v2209_v17  ;;  %v2393_v17 = vstv %s2547_s8  ;;  %v2396_v23 = vadd.s32 4294967294, %v4365_v13 }
 0x3ad   :  { %vm2380_vm6 = vcmp.ge.s32.totalorder %v2379_v14, 0  ;;  %vm2381_vm7 = vcmp.lt.s32.totalorder %v2379_v14, 16 }
 0x3ae   :  { %v2299_v26 = vadd.f32 %v2296_v24, %v4008_v43  ;;  %v3288_v43 = vld [vmem:[%s4249_s0 + $0x4] sm:$0xf]  ;;  %s2551_s0 = sld [smem:[#allocation5 + $0x83]]  ;;  %vm2397_vm8 = vcmp.ge.s32.totalorder %v2396_v23, 0  ;;  %vm2398_vm9 = vcmp.lt.s32.totalorder %v2396_v23, 16  ;;  %vm4207_vm12 = vmand %vm2380_vm6, %vm2381_vm7 }
 0x3af   :  { %vm2399_vm13 = vmand %vm2397_vm8, %vm2398_vm9 }
 0x3b0   :  { %v2544_v32 = vmul.f32 -1.442695, %v2299_v26  ;;  %v2376_v26 = vstv %s4185_s29 }
 0x3b2   :  { %3280 = vpow2.f32 %v2544_v32  ;;  %v2390_v32 = vstv %s4187_s30 }
 0x3b4   :  { %v2423_v56 = vstv %s2551_s0 }
 0x3bf   :  { %v3281_v34 = vpop.eup %3280 }
 0x3c0   :  { %v2303_v42 = vadd.f32 1.0, %v3281_v34  ;;  %v2410_v34 = vstv %s2549_s5 }
 0x3c2   :  { %3282 = vrcp.f32 %v2303_v42  ;;  %v2413_v42 = vadd.s32 4294967295, %v4365_v13 }
 0x3c4   :  { %vm2414_vm10 = vcmp.ge.s32.totalorder %v2413_v42, 0  ;;  %vm2415_vm11 = vcmp.lt.s32.totalorder %v2413_v42, 16 }
 0x3c5   :  { %vm4224_vm14 = vmand %vm2414_vm10, %vm2415_vm11 }
 0x3cf   :  { %v3283_v60 = vpop.eup %3282 }
 0x3d0   :  { %v2316_v5 = vrot.slane %v3283_v60, %v2315_v46  ;;  %v2309_v21 = vrot.slane %v3283_v60, %v4160_v57  ;;  %v2373_v60 = vstv %s2372_s9 }
 0x3d2   :  { %2318 = vbcast.lane.b32.xlu1 %v2316_v5, 256  ;;  %2311 = vbcast.lane.b32.xlu0 %v2309_v21, 256  ;;  %v2407_v21 = vstv %s4189_s10 }
 0x444   :  { %v2319_v27 = vpop.permute.xlu1 %2318  ;;  %v2312_v52 = vpop.permute.xlu0 %2311 }
 0x445   :  { %v4166_v30 = vmul.f32 %v3288_v43, %v2319_v27  ;;  %v4171_v0 = vmul.f32 %v3289_v16, %v2312_v52 }
 0x447   :  { %v2329_v20 = vsel %vm43_vm0, %v4166_v30, 0.0  ;;  %v2345_v49 = vsel %vm43_vm0, %v4166_v30, -inf  ;;  %v2322_v19 = vsel %vm43_vm0, %v4171_v0, 0.0  ;;  %v2338_v51 = vsel %vm43_vm0, %v4171_v0, -inf }
 0x448   :  { %v2330_v28 = vrot.slane %v2329_v20, 4  ;;  %v2346_v48 = vrot.slane %v2345_v49, 4  ;;  %v2323_v7 = vrot.slane %v2322_v19, 4  ;;  %v2339_v39 = vrot.slane %v2338_v51, 4 }
 0x44a   :  { %v2331_v8 = vadd.f32 %v2330_v28, %v2329_v20  ;;  %v2347_v53 = vmax.f32 %v2345_v49, %v2346_v48  ;;  %v2324_v50 = vadd.f32 %v2323_v7, %v2322_v19  ;;  %v2340_v6 = vmax.f32 %v2338_v51, %v2339_v39 }
 0x44b   :  { %v2439_v19 = vstv %s4191_s1  ;;  %v2366_v48 = vstv %s4255_s6  ;;  %v2436_v39 = vstv %s4195_s11  ;;  %s3336_s6 = smov [#allocation8]  }
 0x44c   :  { %v2332_v10 = vrot.slane %v2331_v8, 2  ;;  %v2348_v54 = vrot.slane %v2347_v53, 2  ;;  %v2325_v9 = vrot.slane %v2324_v50, 2  ;;  %v2341_v11 = vrot.slane %v2340_v6, 2  ;;  %s2530_s17 = sshll.u32 %s3336_s6, 4  ;;  %s2531_s17 = int_to_ptr.vmem [resolvable:$true] %s2530_s17 }
 0x44d   :  { %s3302_s2 = scalar_lea.vmem %s2531_s17, 128  ;;  %p3307_p6 = scmp.lt.s32.totalorder %s2531_s17, %s2531_s17 }
 0x44e   :  { %v2333_v55 = vadd.f32 %v2332_v10, %v2331_v8  ;;  %v2349_v36 = vmax.f32 %v2347_v53, %v2348_v54  ;;  %v2326_v12 = vadd.f32 %v2325_v9, %v2324_v50  ;;  %v2342_v18 = vmax.f32 %v2340_v6, %v2341_v11  ;;  %p3303_p5 = scmp.ne.s32.totalorder %s2531_s17, %s3302_s2  ;;  %p3308_p7 = scmp.lt.s32.totalorder %s3302_s2, %s3302_s2 }
 0x44f   :  { %v2453_v11 = vstv %s4198_s12 }
 0x450   :  { %v2334_v1 = vrot.slane %v2333_v55, 1  ;;  %v2350_v15 = vrot.slane %v2349_v36, 1  ;;  %v2327_v22 = vrot.slane %v2326_v12, 1  ;;  %v2343_v25 = vrot.slane %v2342_v18, 1  ;;  %p3309_p8 = por %p3308_p7, %p3307_p6 }
 0x452   :  { %v2335_v29 = vadd.f32 %v2334_v1, %v2333_v55  ;;  %v2351_v31 = vmax.f32 %v2349_v36, %v2350_v15  ;;  %v2328_v33 = vadd.f32 %v2327_v22, %v2326_v12  ;;  %v2344_v35 = vmax.f32 %v2342_v18, %v2343_v25  ;;  %p3310_p9 = pnand %p3309_p8, %p3303_p5 }
 0x453   :  { %v2442_v55 = vadd.s32 1, %v4365_v13  ;;  %v2456_v36 = vstv %s4202_s13  ;;  %v2470_v15 = vstv %s4205_s14  ;;  %v2459_v22 = vadd.s32 2, %v4365_v13 }
 0x454   :  { %v2337_v37 = vmul.f32 0.25, %v2335_v29  ;;  %v2336_v38 = vmul.f32 0.25, %v2328_v33  ;;  %v2360_v40 = vsel %vm95_vm3, %v2351_v31, %v2344_v35 }
 0x455   :  { %2362 = vst.msk [vmem:[#allocation3] sm:$0x3] %vm2356_vm5, %v2360_v40  ;;  %vm2444_vm1 = vcmp.lt.s32.totalorder %v2442_v55, 16  ;;  %v2473_v40 = vstv %s4212_s15  ;;  %vm2461_vm2 = vcmp.lt.s32.totalorder %v2459_v22, 16 }
 0x456   :  { %v2354_v41 = vsel %vm95_vm3, %v2337_v37, %v2336_v38 }
 0x457   :  { %2357 = vst.msk [vmem:[#allocation2] sm:$0x3] %vm2356_vm5, %v2354_v41  ;;  %v2476_v41 = vadd.s32 3, %v4365_v13 }
 0x459   :  { %vm2478_vm3 = vcmp.lt.s32.totalorder %v2476_v41, 16 }
 0x45c   :  { %v2364_v44 = vld [vmem:[#allocation3] sm:$0x3] }
 0x45d   :  { %2370 = vrot.lane.b32.xlu1 %v2364_v44, %s3329_s23  ;;  %v2424_v59 = vmul.f32 %v2423_v56, %v2364_v44 }
 0x45e   :  { %v2363_v58 = vld [vmem:[#allocation2] sm:$0x3] }
 0x45f   :  { %2385 = vrot.lane.b32.xlu0 %v2363_v58, %s3330_s24  ;;  %v2421_v61 = vmul.f32 %v2420_v47, %v2363_v58 }
 0x461   :  { %2387 = vrot.lane.b32.xlu1 %v2364_v44, %s3330_s24  ;;  %v4183_v62 = vadd.f32 %v2424_v59, %v2421_v61 }
 0x463   :  { %2402 = vrot.lane.b32.xlu0 %v2363_v58, %s3331_s25 }
 0x465   :  { %2404 = vrot.lane.b32.xlu1 %v2364_v44, %s3331_s25 }
 0x467   :  { %2431 = vrot.lane.b32.xlu0 %v2363_v58, %s3332_s26 }
 0x469   :  { %2368 = vrot.lane.b32.xlu1 %v2363_v58, %s3329_s23 }
 0x46b   :  { %2448 = vrot.lane.b32.xlu0 %v2363_v58, %s3333_s27 }
 0x46d   :  { %2433 = vrot.lane.b32.xlu1 %v2364_v44, %s3332_s26 }
 0x46f   :  { %2465 = vrot.lane.b32.xlu0 %v2363_v58, %s3334_s28 }
 0x471   :  { %2450 = vrot.lane.b32.xlu1 %v2364_v44, %s3333_s27 }
 0x475   :  { %2467 = vrot.lane.b32.xlu1 %v2364_v44, %s3334_s28  ;;  %v2429_v44 = vsel %vm2427_vm15, %v4183_v62, 0.0  ;;  %v3335_v62 = vmov 1966171168  }
 0x4cf   :  { %v2371_v63 = vpop.permute.xlu1 %2370 }
 0x4d0   :  { %v2377_v52 = vmul.f32 %v2376_v26, %v2371_v63 }
 0x4d1   :  { %v2386_v2 = vpop.permute.xlu0 %2385 }
 0x4d2   :  { %v2391_v43 = vmul.f32 %v2390_v32, %v2386_v2  ;;  %v2490_v32 = vunpack.c.l.s4 %v3335_v62 }
 0x4d3   :  { %v2388_v3 = vpop.permute.xlu1 %2387 }
 0x4d4   :  { %v2394_v5 = vmul.f32 %v2393_v17, %v2388_v3 }
 0x4d5   :  { %v2403_v4 = vpop.permute.xlu0 %2402 }
 0x4d6   :  { %v2395_v51 = vadd.f32 %v2394_v5, %v2391_v43  ;;  %v2408_v28 = vmul.f32 %v2407_v21, %v2403_v4 }
 0x4d7   :  { %v2405_v24 = vpop.permute.xlu1 %2404 }
 0x4d8   :  { %v2411_v16 = vmul.f32 %v2410_v34, %v2405_v24  ;;  %v2400_v12 = vsel %vm2399_vm13, %v2395_v51, 0.0  ;;  %v2491_v34 = vunpack.c.0.s8 %v2490_v32 }
 0x4d9   :  { %v2432_v46 = vpop.permute.xlu0 %2431 }
 0x4da   :  { %v2412_v50 = vadd.f32 %v2411_v16, %v2408_v28  ;;  %v2437_v18 = vmul.f32 %v2436_v39, %v2432_v46  ;;  %v2494_v42 = vsub.s32 %v2491_v34, %v4364_v45 }
 0x4db   :  { %v2369_v27 = vpop.permute.xlu1 %2368 }
 0x4dc   :  { %v2374_v20 = vmul.f32 %v2373_v60, %v2369_v27  ;;  %v2417_v29 = vsel %vm4224_vm14, %v2412_v50, 0.0 }
 0x4dd   :  { %v2449_v8 = vpop.permute.xlu0 %2448 }
 0x4de   :  { %v2378_v7 = vadd.f32 %v2377_v52, %v2374_v20  ;;  %v2454_v31 = vmul.f32 %v2453_v11, %v2449_v8 }
 0x4df   :  { %v2434_v53 = vpop.permute.xlu1 %2433 }
 0x4e0   :  { %v2383_v6 = vsel %vm4207_vm12, %v2378_v7, 0.0  ;;  %v2440_v10 = vmul.f32 %v2439_v19, %v2434_v53 }
 0x4e1   :  { %v2384_v9 = vadd.f32 %v2383_v6, %v2366_v48  ;;  %v2466_v38 = vpop.permute.xlu0 %2465 }
 0x4e2   :  { %v2441_v33 = vadd.f32 %v2440_v10, %v2437_v18  ;;  %v2471_v61 = vmul.f32 %v2470_v15, %v2466_v38 }
 0x4e3   :  { %v2401_v1 = vadd.f32 %v2400_v12, %v2384_v9  ;;  %v2451_v25 = vpop.permute.xlu1 %2450 }
 0x4e4   :  { %v2457_v35 = vmul.f32 %v2456_v36, %v2451_v25  ;;  %v2446_v59 = vsel %vm2444_vm1, %v2441_v33, 0.0 }
 0x4e5   :  { %v2418_v37 = vadd.f32 %v2417_v29, %v2401_v1 }
 0x4e6   :  { %v2458_v47 = vadd.f32 %v2457_v35, %v2454_v31 }
 0x4e7   :  { %v2430_v56 = vadd.f32 %v2429_v44, %v2418_v37  ;;  %v2468_v58 = vpop.permute.xlu1 %2467 }
 0x4e8   :  { %v2474_v63 = vmul.f32 %v2473_v40, %v2468_v58  ;;  %v2463_v3 = vsel %vm2461_vm2, %v2458_v47, 0.0 }
 0x4e9   :  { %v2447_v2 = vadd.f32 %v2446_v59, %v2430_v56 }
 0x4ea   :  { %v2475_v4 = vadd.f32 %v2474_v63, %v2471_v61 }
 0x4eb   :  { %v2464_v14 = vadd.f32 %v2463_v3, %v2447_v2 }
 0x4ec   :  { %v2480_v17 = vsel %vm2478_vm3, %v2475_v4, 0.0 }
 0x4ed   :  { %v2481_v23 = vadd.f32 %v2480_v17, %v2464_v14 }
 0x4ef   :  { %v2558_v24 = vmul.f32 -1.442695, %v2481_v23 }
 0x4f1   :  { %3284 = vpow2.f32 %v2558_v24 }
 0x4fe   :  { %v3285_v26 = vpop.eup %3284 }
 0x4ff   :  { %v2485_v13 = vadd.f32 1.0, %v3285_v26 }
 0x501   :  { %3286 = vrcp.f32 %v2485_v13 }
 0x50e   :  { %v3287_v46 = vpop.eup %3286 }
 0x50f   :  { %v2495_v60 = vrot.slane %v3287_v46, %v2494_v42 }
 0x511   :  { %v2496_v5 = vcombine.high %v2495_v60, %v2495_v60  ;;  %v2503_v21 = vrot.slane %v2495_v60, %v2494_v42 }
 0x513   :  { %v2510_v27 = vrot.slane %v2496_v5, %v2494_v42  ;;  %v2514_v52 = vrot.slane %v2503_v21, %v4160_v57 }
 0x515   :  { %v2518_v43 = vrot.slane %v2510_v27, %v4160_v57  ;;  %v2521_v16 = vmul.f32 %v2514_v52, %v4171_v0 }
 0x517   :  { %v2522_v20 = vmul.f32 %v2518_v43, %v4166_v30  ;;  %2523 = vst.msk [vmem:[#allocation8] sm:$0xf] %vm43_vm0, %v2521_v16 }
 0x519   :  { %2524 = vst.msk [vmem:[#allocation8 + $0x4] sm:$0xf] %vm43_vm0, %v2522_v20 }
 0x51a   :  { %3313 = shalt.err (!%p3310_p9)
}
 0x51b   :  { %s3337_s18 = smov 64   ;;  %s3338_s4 = smov 4  }
 0x51c   :  { %2536 = dma.vmem_to_hbm [thread:$0]  %s2531_s17, 128, %s4256_s7, [#allocation6], %s3337_s18, %s3337_s18, %s3338_s4  }
 0x51d   :  { %3324 = dma.done.wait [#allocation6], 128  }
 0x51e   :  { %3325 = vsyncadd [#allocation6], 4294967168 }
 0x51f   :  { %2540 = vsyncpa [#allocation6], 1 }
 0x520   :  { %2541 = vsyncpa [#allocation7], 1 }

</bundles_post_ra>
